<compile_context>
chip_gen: v5e
topology: v5e:2x2
jax: 0.10.0
libtpu: 0.0.40
codegen_flags: <defaults>
</compile_context>

<pallas_src>
import math
import jax
import jax.numpy as jnp
from jax import lax
from jax.experimental import pallas as pl
from jax.experimental.pallas import tpu as pltpu

D_IN = 64
D_H = 256
TILE_N_MAX = 4096


def _round_up(a, b):
    return ((a + b - 1) // b) * b


def mlp_bf_kernel(x_ref, y_ref,
                  w1_ref, b1_ref,
                  w2_ref, b2_ref,
                  w3_ref, b3_ref,
                  wfT_ref, bf_ref,
                  loss_ref, preds_ref):
    x_blk = x_ref[...]                                          # (T, 64) bf16

    # h1 = relu(W1 @ x^T + b1): contract W1 dim 1 against x dim 1 to get a
    # feature-major (256, T) result; the x transpose happens on-chip (MXU
    # operand staging / XLU) instead of as a wrapper-side HBM pass.
    h1 = jnp.maximum(
        lax.dot_general(w1_ref[...], x_blk,
                        dimension_numbers=(((1,), (1,)), ((), ())),
                        preferred_element_type=jnp.float32)
        + b1_ref[...], 0.0).astype(jnp.bfloat16)                # (256, T) bf16

    h2 = (jnp.maximum(
        jnp.dot(w2_ref[...], h1, preferred_element_type=jnp.float32)
        + b2_ref[...], 0.0).astype(jnp.bfloat16) + h1)          # (256, T) bf16

    h3 = (jnp.maximum(
        jnp.dot(w3_ref[...], h2, preferred_element_type=jnp.float32)
        + b3_ref[...], 0.0).astype(jnp.bfloat16) + h2)          # (256, T) bf16

    # fc (256 -> 1) on the MXU: (1,256) @ (256,T) -> (1,T); the MXU has slack
    # after the three GEMMs and this avoids a cross-sublane VALU/XLU reduce.
    z = (jnp.dot(wfT_ref[...], h3, preferred_element_type=jnp.float32)
         + bf_ref[...])                                          # (1, T) f32

    y = y_ref[...]                                               # (1, T) f32

    # Numerically stable BCE-with-logits (f32):
    #   max(z,0) - z*y + log(1 + exp(-|z|)); reuse exp(-|z|) for the sigmoid.
    e = jnp.exp(-jnp.abs(z))
    loss_ref[...] = jnp.maximum(z, 0.0) - z * y + jnp.log1p(e)   # (1, T)

    inv = pl.reciprocal(1.0 + e, approx=True)
    sig = jnp.where(z >= 0.0, inv, e * inv)                      # sigmoid(z)
    preds_ref[...] = jnp.clip(sig, 0.0, 1.0)   # guard approx-recip overshoot


def _pick_tile_n(n):
    n_aligned = _round_up(max(n, 1), 128)
    # Keep >=2 grid steps whenever the batch spans more than one 128-row group,
    # so v7x's two TensorCores both get work (batch axis is "parallel").
    if n_aligned > 128:
        cap = _round_up(max(n_aligned // 2, 128), 128)
    else:
        cap = n_aligned
    return min(TILE_N_MAX, cap)


def mlp_bf_forward(x, y, params):
    """x: (N, 64) f32, y: (N,) f32 in {0,1}. Returns (loss scalar, preds (N,))."""
    n = x.shape[0]
    if n == 0:
        raise ValueError("MLPForBF forward requires a non-empty batch")
    w1, b1, w2, b2, w3, b3, wf, bf = params

    tile_n = _pick_tile_n(n)
    n_pad = _round_up(n, tile_n)
    grid = (n_pad // tile_n,)

    # x stays row-major (contiguous row-slab DMAs) and is streamed as bf16;
    # padded rows are zeros and are sliced away before any reduction.
    x_pad = jnp.pad(x.astype(jnp.bfloat16), ((0, n_pad - n), (0, 0)))       # (Np, 64)
    y_pad = jnp.pad(y.astype(jnp.float32)[None, :], ((0, 0), (0, n_pad - n)))  # (1, Np)

    # bf16 weights for the MXU; biases / fc bias stay f32.
    w1b = w1.astype(jnp.bfloat16)
    w2b = w2.astype(jnp.bfloat16)
    w3b = w3.astype(jnp.bfloat16)
    wfT = wf.astype(jnp.bfloat16).reshape(1, D_H)    # (1, 256) row for the MXU

    x_spec = pl.BlockSpec((tile_n, D_IN), lambda i: (i, 0))
    row_spec = pl.BlockSpec((1, tile_n), lambda i: (0, i))
    const = lambda shape: pl.BlockSpec(shape, lambda i: (0, 0))

    loss_elems, preds_pad = pl.pallas_call(
        mlp_bf_kernel,
        out_shape=(jax.ShapeDtypeStruct((1, n_pad), jnp.float32),   # per-elem BCE
                   jax.ShapeDtypeStruct((1, n_pad), jnp.float32)),  # sigmoid preds
        grid=grid,
        in_specs=[
            x_spec,                       # x (bf16, natural (N,64) layout)
            row_spec,                     # y
            const((D_H, D_IN)),           # W1 (bf16)
            const((D_H, 1)),              # b1
            const((D_H, D_H)),            # W2 (bf16)
            const((D_H, 1)),              # b2
            const((D_H, D_H)),            # W3 (bf16)
            const((D_H, 1)),              # b3
            const((1, D_H)),              # wf (fc weight row, bf16)
            const((1, 1)),                # bf (fc bias)
        ],
        out_specs=(row_spec, row_spec),
        compiler_params=pltpu.CompilerParams(
            dimension_semantics=("parallel",),
            vmem_limit_bytes=48 * 1024 * 1024),
    )(x_pad, y_pad, w1b, b1, w2b, b2, w3b, b3, wfT, bf)

    # Global-N mean over valid rows only (padded rows sliced away).
    loss = jnp.sum(loss_elems[0, :n]) / n
    preds = preds_pad[0, :n]
    return loss, preds


def init_params(key):
    """Deterministic init mimicking nn.Linear defaults (uniform +-1/sqrt(fan_in)).
    Weights are stored PyTorch-style as (out_features, in_features); biases as
    columns (out_features, 1); the fc weight as a (in_features, 1) column."""
    dims = [(D_IN, D_H), (D_H, D_H), (D_H, D_H)]
    params = []
    for (fan_in, fan_out) in dims:
        key, kw, kb = jax.random.split(key, 3)
        bound = 1.0 / math.sqrt(fan_in)
        w = jax.random.uniform(kw, (fan_out, fan_in), jnp.float32, -bound, bound)
        b = jax.random.uniform(kb, (fan_out, 1), jnp.float32, -bound, bound)
        params += [w, b]
    # fc: 256 -> 1
    key, kw, kb = jax.random.split(key, 3)
    bound = 1.0 / math.sqrt(D_H)
    wf = jax.random.uniform(kw, (D_H, 1), jnp.float32, -bound, bound)
    bf = jax.random.uniform(kb, (1, 1), jnp.float32, -bound, bound)
    params += [wf, bf]
    return params


if __name__ == "__main__":
    key = jax.random.PRNGKey(0)
    k_params, k_x, k_y = jax.random.split(key, 3)

    params = init_params(k_params)

    batch = 8
    x = jax.random.normal(k_x, (batch, D_IN), dtype=jnp.float32)
    y = (jax.random.uniform(k_y, (batch,)) > 0.5).astype(jnp.float32)

    loss, preds = jax.jit(mlp_bf_forward)(x, y, params)
    jax.block_until_ready((loss, preds))

    assert loss.shape == () and preds.shape == (batch,)
    assert bool(jnp.isfinite(loss)) and bool(jnp.all(jnp.isfinite(preds)))
    assert bool(jnp.all((preds >= 0.0) & (preds <= 1.0)))
    print("KERNEL_OK")
</pallas_src>

<mosaic_0001>
module attributes {stable_mosaic.version = 11 : i64} {
  func.func @mlp_bf_kernel(%arg0: i32, %arg1: memref<128x64xbf16, #tpu.memory_space<vmem>>, %arg2: memref<1x128xf32, #tpu.memory_space<vmem>>, %arg3: memref<256x64xbf16, #tpu.memory_space<vmem>>, %arg4: memref<256x1xf32, #tpu.memory_space<vmem>>, %arg5: memref<256x256xbf16, #tpu.memory_space<vmem>>, %arg6: memref<256x1xf32, #tpu.memory_space<vmem>>, %arg7: memref<256x256xbf16, #tpu.memory_space<vmem>>, %arg8: memref<256x1xf32, #tpu.memory_space<vmem>>, %arg9: memref<1x256xbf16, #tpu.memory_space<vmem>>, %arg10: memref<1x1xf32, #tpu.memory_space<vmem>>, %arg11: memref<1x128xf32, #tpu.memory_space<vmem>>, %arg12: memref<1x128xf32, #tpu.memory_space<vmem>>) attributes {dimension_semantics = [#tpu.dimension_semantics<parallel>], iteration_bounds = array<i64: 1>, scalar_prefetch = 0 : i64, scratch_operands = 0 : i64, tpu.core_type = #tpu.core_type<tc>, window_params = [{transform_indices = @transform_0, window_bounds = array<i64: 128, 64>}, {transform_indices = @transform_1, window_bounds = array<i64: 1, 128>}, {pipeline_mode = #tpu.pipeline_mode<synchronous>, transform_indices = @transform_2, window_bounds = array<i64: 256, 64>}, {pipeline_mode = #tpu.pipeline_mode<synchronous>, transform_indices = @transform_3, window_bounds = array<i64: 256, 1>}, {pipeline_mode = #tpu.pipeline_mode<synchronous>, transform_indices = @transform_4, window_bounds = array<i64: 256, 256>}, {pipeline_mode = #tpu.pipeline_mode<synchronous>, transform_indices = @transform_5, window_bounds = array<i64: 256, 1>}, {pipeline_mode = #tpu.pipeline_mode<synchronous>, transform_indices = @transform_6, window_bounds = array<i64: 256, 256>}, {pipeline_mode = #tpu.pipeline_mode<synchronous>, transform_indices = @transform_7, window_bounds = array<i64: 256, 1>}, {pipeline_mode = #tpu.pipeline_mode<synchronous>, transform_indices = @transform_8, window_bounds = array<i64: 1, 256>}, {pipeline_mode = #tpu.pipeline_mode<synchronous>, transform_indices = @transform_9, window_bounds = array<i64: 1, 1>}, {transform_indices = @transform_10, window_bounds = array<i64: 1, 128>}, {transform_indices = @transform_11, window_bounds = array<i64: 1, 128>}]} {
    %c0 = arith.constant 0 : index
    %c0_0 = arith.constant 0 : index
    %0 = vector.load %arg1[%c0, %c0_0] : memref<128x64xbf16, #tpu.memory_space<vmem>>, vector<128x64xbf16>
    %c0_1 = arith.constant 0 : index
    %c0_2 = arith.constant 0 : index
    %1 = vector.load %arg3[%c0_1, %c0_2] : memref<256x64xbf16, #tpu.memory_space<vmem>>, vector<256x64xbf16>
    %cst = arith.constant dense<0.000000e+00> : vector<256x128xf32>
    %2 = tpu.matmul %1, %0, %cst {dimension_numbers = #tpu.dot_dimension_numbers<[1], [1], [0], [0], [0, 0, 1, 0], [], []>} : vector<256x64xbf16>, vector<128x64xbf16>, vector<256x128xf32> -> vector<256x128xf32>
    %c0_3 = arith.constant 0 : index
    %c0_4 = arith.constant 0 : index
    %3 = vector.load %arg4[%c0_3, %c0_4] : memref<256x1xf32, #tpu.memory_space<vmem>>, vector<256x1xf32>
    %4 = vector.broadcast %3 : vector<256x1xf32> to vector<256x128xf32>
    %5 = arith.addf %2, %4 : vector<256x128xf32>
    %cst_5 = arith.constant 0.000000e+00 : f32
    %6 = vector.broadcast %cst_5 : f32 to vector<256x128xf32>
    %7 = arith.maximumf %5, %6 : vector<256x128xf32>
    %8 = arith.truncf %7 : vector<256x128xf32> to vector<256x128xbf16>
    %c0_6 = arith.constant 0 : index
    %c0_7 = arith.constant 0 : index
    %9 = vector.load %arg5[%c0_6, %c0_7] : memref<256x256xbf16, #tpu.memory_space<vmem>>, vector<256x256xbf16>
    %cst_8 = arith.constant dense<0.000000e+00> : vector<256x128xf32>
    %10 = tpu.matmul %9, %8, %cst_8 {dimension_numbers = #tpu.dot_dimension_numbers<[1], [0], [0], [1], [0, 0, 1, 1], [], []>} : vector<256x256xbf16>, vector<256x128xbf16>, vector<256x128xf32> -> vector<256x128xf32>
    %c0_9 = arith.constant 0 : index
    %c0_10 = arith.constant 0 : index
    %11 = vector.load %arg6[%c0_9, %c0_10] : memref<256x1xf32, #tpu.memory_space<vmem>>, vector<256x1xf32>
    %12 = vector.broadcast %11 : vector<256x1xf32> to vector<256x128xf32>
    %13 = arith.addf %10, %12 : vector<256x128xf32>
    %cst_11 = arith.constant 0.000000e+00 : f32
    %14 = vector.broadcast %cst_11 : f32 to vector<256x128xf32>
    %15 = arith.maximumf %13, %14 : vector<256x128xf32>
    %16 = arith.truncf %15 : vector<256x128xf32> to vector<256x128xbf16>
    %17 = arith.addf %16, %8 : vector<256x128xbf16>
    %c0_12 = arith.constant 0 : index
    %c0_13 = arith.constant 0 : index
    %18 = vector.load %arg7[%c0_12, %c0_13] : memref<256x256xbf16, #tpu.memory_space<vmem>>, vector<256x256xbf16>
    %cst_14 = arith.constant dense<0.000000e+00> : vector<256x128xf32>
    %19 = tpu.matmul %18, %17, %cst_14 {dimension_numbers = #tpu.dot_dimension_numbers<[1], [0], [0], [1], [0, 0, 1, 1], [], []>} : vector<256x256xbf16>, vector<256x128xbf16>, vector<256x128xf32> -> vector<256x128xf32>
    %c0_15 = arith.constant 0 : index
    %c0_16 = arith.constant 0 : index
    %20 = vector.load %arg8[%c0_15, %c0_16] : memref<256x1xf32, #tpu.memory_space<vmem>>, vector<256x1xf32>
    %21 = vector.broadcast %20 : vector<256x1xf32> to vector<256x128xf32>
    %22 = arith.addf %19, %21 : vector<256x128xf32>
    %cst_17 = arith.constant 0.000000e+00 : f32
    %23 = vector.broadcast %cst_17 : f32 to vector<256x128xf32>
    %24 = arith.maximumf %22, %23 : vector<256x128xf32>
    %25 = arith.truncf %24 : vector<256x128xf32> to vector<256x128xbf16>
    %26 = arith.addf %25, %17 : vector<256x128xbf16>
    %c0_18 = arith.constant 0 : index
    %c0_19 = arith.constant 0 : index
    %27 = vector.load %arg9[%c0_18, %c0_19] : memref<1x256xbf16, #tpu.memory_space<vmem>>, vector<1x256xbf16>
    %cst_20 = arith.constant dense<0.000000e+00> : vector<1x128xf32>
    %28 = tpu.matmul %27, %26, %cst_20 {dimension_numbers = #tpu.dot_dimension_numbers<[1], [0], [0], [1], [0, 0, 1, 1], [], []>} : vector<1x256xbf16>, vector<256x128xbf16>, vector<1x128xf32> -> vector<1x128xf32>
    %c0_21 = arith.constant 0 : index
    %c0_22 = arith.constant 0 : index
    %29 = vector.load %arg10[%c0_21, %c0_22] : memref<1x1xf32, #tpu.memory_space<vmem>>, vector<1x1xf32>
    %30 = vector.broadcast %29 : vector<1x1xf32> to vector<1x128xf32>
    %31 = arith.addf %28, %30 : vector<1x128xf32>
    %c0_23 = arith.constant 0 : index
    %c0_24 = arith.constant 0 : index
    %32 = vector.load %arg2[%c0_23, %c0_24] : memref<1x128xf32, #tpu.memory_space<vmem>>, vector<1x128xf32>
    %33 = math.absf %31 : vector<1x128xf32>
    %cst_25 = arith.constant 0.000000e+00 : f32
    %34 = vector.broadcast %cst_25 : f32 to vector<1x128xf32>
    %35 = arith.subf %34, %33 : vector<1x128xf32>
    %36 = math.exp %35 : vector<1x128xf32>
    %cst_26 = arith.constant 0.000000e+00 : f32
    %37 = vector.broadcast %cst_26 : f32 to vector<1x128xf32>
    %38 = arith.maximumf %31, %37 : vector<1x128xf32>
    %39 = arith.mulf %31, %32 : vector<1x128xf32>
    %40 = arith.subf %38, %39 : vector<1x128xf32>
    %41 = math.log1p %36 : vector<1x128xf32>
    %42 = arith.addf %40, %41 : vector<1x128xf32>
    %c0_27 = arith.constant 0 : index
    %c0_28 = arith.constant 0 : index
    %43 = vector.load %arg11[%c0_27, %c0_28] : memref<1x128xf32, #tpu.memory_space<vmem>>, vector<1x128xf32>
    tpu.vector_store %arg11[%c0_27, %c0_28], %42 {strides = array<i32>} : memref<1x128xf32, #tpu.memory_space<vmem>>, vector<1x128xf32>,
    %cst_29 = arith.constant 1.000000e+00 : f32
    %44 = vector.broadcast %cst_29 : f32 to vector<1x128xf32>
    %45 = arith.addf %44, %36 : vector<1x128xf32>
    %46 = tpu.reciprocal %45 {approx = true} : vector<1x128xf32> -> vector<1x128xf32>
    %cst_30 = arith.constant 0.000000e+00 : f32
    %47 = vector.broadcast %cst_30 : f32 to vector<1x128xf32>
    %48 = arith.cmpf oge, %31, %47 : vector<1x128xf32>
    %49 = arith.mulf %36, %46 : vector<1x128xf32>
    %50 = arith.select %48, %46, %49 : vector<1x128xi1>, vector<1x128xf32>
    %cst_31 = arith.constant 0.000000e+00 : f32
    %cst_32 = arith.constant 1.000000e+00 : f32
    %51 = vector.broadcast %cst_31 : f32 to vector<1x128xf32>
    %52 = arith.maximumf %51, %50 : vector<1x128xf32>
    %53 = vector.broadcast %cst_32 : f32 to vector<1x128xf32>
    %54 = arith.minimumf %53, %52 : vector<1x128xf32>
    %c0_33 = arith.constant 0 : index
    %c0_34 = arith.constant 0 : index
    %55 = vector.load %arg12[%c0_33, %c0_34] : memref<1x128xf32, #tpu.memory_space<vmem>>, vector<1x128xf32>
    tpu.vector_store %arg12[%c0_33, %c0_34], %54 {strides = array<i32>} : memref<1x128xf32, #tpu.memory_space<vmem>>, vector<1x128xf32>,
    return
  }
  func.func @transform_0(%arg0: i32) -> (i32, i32) {
    %c0_i32 = arith.constant 0 : i32
    %c0_i32_0 = arith.constant 0 : i32
    return %arg0, %c0_i32 : i32, i32
  }
  func.func @transform_1(%arg0: i32) -> (i32, i32) {
    %c0_i32 = arith.constant 0 : i32
    %c0_i32_0 = arith.constant 0 : i32
    return %c0_i32, %arg0 : i32, i32
  }
  func.func @transform_2(%arg0: i32) -> (i32, i32) {
    %c0_i32 = arith.constant 0 : i32
    %c0_i32_0 = arith.constant 0 : i32
    %c0_i32_1 = arith.constant 0 : i32
    return %c0_i32, %c0_i32_0 : i32, i32
  }
  func.func @transform_3(%arg0: i32) -> (i32, i32) {
    %c0_i32 = arith.constant 0 : i32
    %c0_i32_0 = arith.constant 0 : i32
    %c0_i32_1 = arith.constant 0 : i32
    return %c0_i32, %c0_i32_0 : i32, i32
  }
  func.func @transform_4(%arg0: i32) -> (i32, i32) {
    %c0_i32 = arith.constant 0 : i32
    %c0_i32_0 = arith.constant 0 : i32
    %c0_i32_1 = arith.constant 0 : i32
    return %c0_i32, %c0_i32_0 : i32, i32
  }
  func.func @transform_5(%arg0: i32) -> (i32, i32) {
    %c0_i32 = arith.constant 0 : i32
    %c0_i32_0 = arith.constant 0 : i32
    %c0_i32_1 = arith.constant 0 : i32
    return %c0_i32, %c0_i32_0 : i32, i32
  }
  func.func @transform_6(%arg0: i32) -> (i32, i32) {
    %c0_i32 = arith.constant 0 : i32
    %c0_i32_0 = arith.constant 0 : i32
    %c0_i32_1 = arith.constant 0 : i32
    return %c0_i32, %c0_i32_0 : i32, i32
  }
  func.func @transform_7(%arg0: i32) -> (i32, i32) {
    %c0_i32 = arith.constant 0 : i32
    %c0_i32_0 = arith.constant 0 : i32
    %c0_i32_1 = arith.constant 0 : i32
    return %c0_i32, %c0_i32_0 : i32, i32
  }
  func.func @transform_8(%arg0: i32) -> (i32, i32) {
    %c0_i32 = arith.constant 0 : i32
    %c0_i32_0 = arith.constant 0 : i32
    %c0_i32_1 = arith.constant 0 : i32
    return %c0_i32, %c0_i32_0 : i32, i32
  }
  func.func @transform_9(%arg0: i32) -> (i32, i32) {
    %c0_i32 = arith.constant 0 : i32
    %c0_i32_0 = arith.constant 0 : i32
    %c0_i32_1 = arith.constant 0 : i32
    return %c0_i32, %c0_i32_0 : i32, i32
  }
  func.func @transform_10(%arg0: i32) -> (i32, i32) {
    %c0_i32 = arith.constant 0 : i32
    %c0_i32_0 = arith.constant 0 : i32
    return %c0_i32, %arg0 : i32, i32
  }
  func.func @transform_11(%arg0: i32) -> (i32, i32) {
    %c0_i32 = arith.constant 0 : i32
    %c0_i32_0 = arith.constant 0 : i32
    return %c0_i32, %arg0 : i32, i32
  }
}

</mosaic_0001>

<bundles_post_ra>
// kernel: mlp_bf_forward.1
= control target key start
LH: loop header
LB: loop body
LE: loop exit
PB: predicated region body
PF: predicated region fallthrough
CT: control target
= control target key end

     0   :  { %vm399_vm0 = vcmask 523264   ;;  %v2874_v0 = vmov 0   ;;  %s4391_s3 = inlined_call_operand.vmem [shape: f32[256,1], index: 3, kind: input, shape index: {}]   ;;  %s4392_s0 = inlined_call_operand.vmem [shape: bf16[128,64], index: 0, kind: input, shape index: {}]   ;;  %s4393_s2 = inlined_call_operand.vmem [shape: bf16[256,64], index: 2, kind: input, shape index: {}]   ;;  %s4394_s5 = inlined_call_operand.vmem [shape: f32[256,1], index: 5, kind: input, shape index: {}]   ;;  %s4395_s7 = inlined_call_operand.vmem [shape: f32[256,1], index: 7, kind: input, shape index: {}]   ;;  %s4396_s9 = inlined_call_operand.<no memory space> [shape: f32[1,1], index: 9, kind: input, shape index: {}]   ;;  %s4397_s4 = inlined_call_operand.vmem [shape: bf16[256,256], index: 4, kind: input, shape index: {}]   ;;  %s4398_s6 = inlined_call_operand.vmem [shape: bf16[256,256], index: 6, kind: input, shape index: {}]   ;;  %s4399_s8 = inlined_call_operand.vmem [shape: bf16[1,256], index: 8, kind: input, shape index: {}]   ;;  %s4400_s1 = inlined_call_operand.vmem [shape: f32[1,128], index: 1, kind: input, shape index: {}]   ;;  %s4401_s10 = inlined_call_operand.vmem [shape: f32[1,128], index: 10, kind: output, shape index: {0}]   ;;  %s4402_s11 = inlined_call_operand.vmem [shape: f32[1,128], index: 11, kind: output, shape index: {1}]  }
   0x1   :  { %2865 = vset.pattern.permute.xlu0 %v2874_v0  ;;  %v101_v1 = vld [vmem:[%s4391_s3 + $0x70] sm:$0xff]  ;;  %v2759_v2 = vld [vmem:[%s4392_s0 + $0x38] sm:$0xff]  ;;  %2866 = vset.pattern.permute.xlu1 %v2874_v0  ;;  %v99_v3 = vld [vmem:[%s4391_s3 + $0x60] sm:$0xff] }
   0x2   :  { %191 = vperm.xlu0 %2865, %v101_v1   ;;  %181 = vperm.xlu1 %2866, %v99_v3   ;;  %v470_v4 = vsel %vm399_vm0, %v2759_v2, 0  ;;  %v2758_v5 = vld [vmem:[%s4392_s0 + $0x30] sm:$0xff]  ;;  %v102_v7 = vld [vmem:[%s4391_s3 + $0x78] sm:$0xff]  ;;  %v100_v8 = vld [vmem:[%s4391_s3 + $0x68] sm:$0xff] }
   0x3   :  { %2867 = vset.pattern.permute.xlu2 %v2874_v0  ;;  %472 = vmatpush.bf16.xpose.msra.mxu0 %v470_v4  ;;  %v97_v6 = vld [vmem:[%s4391_s3 + $0x50] sm:$0xff]  ;;  %v467_v9 = vsel %vm399_vm0, %v2758_v5, 0  ;;  %v98_v10 = vld [vmem:[%s4391_s3 + $0x58] sm:$0xff]  ;;  %v2757_v11 = vld [vmem:[%s4392_s0 + $0x28] sm:$0xff] }
   0x4   :  { %171 = vperm.xlu2 %2867, %v97_v6   ;;  %v95_v12 = vld [vmem:[%s4391_s3 + $0x40] sm:$0xff]  ;;  %v96_v13 = vld [vmem:[%s4391_s3 + $0x48] sm:$0xff]  ;;  %v464_v14 = vsel %vm399_vm0, %v2757_v11, 0  ;;  %v93_v15 = vld [vmem:[%s4391_s3 + $0x30] sm:$0xff] }
   0x5   :  { %v2756_v16 = vld [vmem:[%s4392_s0 + $0x20] sm:$0xff]  ;;  %v94_v17 = vld [vmem:[%s4391_s3 + $0x38] sm:$0xff]  ;;  %v92_v20 = vld [vmem:[%s4391_s3 + $0x28] sm:$0xff] }
   0x6   :  { %v91_v18 = vld [vmem:[%s4391_s3 + $0x20] sm:$0xff]  ;;  %v461_v19 = vsel %vm399_vm0, %v2756_v16, 0  ;;  %v2755_v21 = vld [vmem:[%s4392_s0 + $0x18] sm:$0xff]  ;;  %v89_v22 = vld [vmem:[%s4391_s3 + $0x10] sm:$0xff] }
   0x7   :  { %v90_v23 = vld [vmem:[%s4391_s3 + $0x18] sm:$0xff]  ;;  %v458_v24 = vsel %vm399_vm0, %v2755_v21, 0  ;;  %v87_v25 = vld [vmem:[%s4391_s3] sm:$0xff]  ;;  %v2754_v26 = vld [vmem:[%s4392_s0 + $0x10] sm:$0xff] }
   0x8   :  { %v88_v27 = vld [vmem:[%s4391_s3 + $0x8] sm:$0xff]  ;;  %v117_v28 = vld [vmem:[%s4391_s3 + $0xf0] sm:$0xff]  ;;  %v455_v29 = vsel %vm399_vm0, %v2754_v26, 0  ;;  %v118_v30 = vld [vmem:[%s4391_s3 + $0xf8] sm:$0xff] }
   0x9   :  { %v2753_v31 = vld [vmem:[%s4392_s0 + $0x8] sm:$0xff]  ;;  %v115_v32 = vld [vmem:[%s4391_s3 + $0xe0] sm:$0xff]  ;;  %v113_v35 = vld [vmem:[%s4391_s3 + $0xd0] sm:$0xff] }
   0xa   :  { %196 = vperm.xlu0 %2865, %v102_v7   ;;  %186 = vperm.xlu1 %2866, %v100_v8   ;;  %v116_v33 = vld [vmem:[%s4391_s3 + $0xe8] sm:$0xff]  ;;  %v452_v34 = vsel %vm399_vm0, %v2753_v31, 0  ;;  %v2752_v36 = vld [vmem:[%s4392_s0] sm:$0xff]  ;;  %v114_v37 = vld [vmem:[%s4391_s3 + $0xd8] sm:$0xff] }
   0xb   :  { %473 = vmatpush.bf16.xpose.msra.mxu0 %v467_v9  ;;  %v111_v38 = vld [vmem:[%s4391_s3 + $0xc0] sm:$0xff]  ;;  %v449_v39 = vsel %vm399_vm0, %v2752_v36, 0  ;;  %v112_v40 = vld [vmem:[%s4391_s3 + $0xc8] sm:$0xff]  ;;  %v109_v41 = vld [vmem:[%s4391_s3 + $0xb0] sm:$0xff] }
   0xc   :  { %176 = vperm.xlu2 %2867, %v98_v10   ;;  %v2760_v42 = vld [vmem:[%s4393_s2] sm:$0xff]  ;;  %v110_v43 = vld [vmem:[%s4391_s3 + $0xb8] sm:$0xff]  ;;  %v108_v45 = vld [vmem:[%s4391_s3 + $0xa8] sm:$0xff] }
   0xd   :  { %v107_v44 = vld [vmem:[%s4391_s3 + $0xa0] sm:$0xff]  ;;  %v105_v46 = vld [vmem:[%s4391_s3 + $0x90] sm:$0xff]  ;;  %v106_v47 = vld [vmem:[%s4391_s3 + $0x98] sm:$0xff] }
   0xe   :  { %v103_v48 = vld [vmem:[%s4391_s3 + $0x80] sm:$0xff]  ;;  %v2761_v49 = vld [vmem:[%s4393_s2 + $0x8] sm:$0xff]  ;;  %v671_v51 = vld [vmem:[%s4394_s5 + $0x70] sm:$0xff] }
   0xf   :  { %v104_v50 = vld [vmem:[%s4391_s3 + $0x88] sm:$0xff]  ;;  %v672_v52 = vld [vmem:[%s4394_s5 + $0x78] sm:$0xff]  ;;  %v669_v53 = vld [vmem:[%s4394_s5 + $0x60] sm:$0xff] }
  0x10   :  { %v670_v54 = vld [vmem:[%s4394_s5 + $0x68] sm:$0xff]  ;;  %v667_v55 = vld [vmem:[%s4394_s5 + $0x50] sm:$0xff]  ;;  %v668_v57 = vld [vmem:[%s4394_s5 + $0x58] sm:$0xff] }
  0x11   :  { %v2762_v56 = vld [vmem:[%s4393_s2 + $0x10] sm:$0xff]  ;;  %v688_v59 = vld [vmem:[%s4394_s5 + $0xf8] sm:$0xff]  ;;  %v665_v60 = vld [vmem:[%s4394_s5 + $0x40] sm:$0xff] }
  0x12   :  { %161 = vperm.xlu0 %2865, %v95_v12   ;;  %166 = vperm.xlu1 %2866, %v96_v13   ;;  %v687_v58 = vld [vmem:[%s4394_s5 + $0xf0] sm:$0xff]  ;;  %v666_v61 = vld [vmem:[%s4394_s5 + $0x48] sm:$0xff]  ;;  %v685_v62 = vld [vmem:[%s4394_s5 + $0xe0] sm:$0xff] }
  0x13   :  { %474 = vmatpush.bf16.xpose.msra.mxu0 %v464_v14  ;;  %v2763_v63 = vld [vmem:[%s4393_s2 + $0x18] sm:$0xff]  ;;  %v686_v0 = vld [vmem:[%s4394_s5 + $0xe8] sm:$0xff]  ;;  %v663_v1 = vld [vmem:[%s4394_s5 + $0x30] sm:$0xff] }
  0x14   :  { %151 = vperm.xlu2 %2867, %v93_v15   ;;  %v664_v2 = vld [vmem:[%s4394_s5 + $0x38] sm:$0xff]  ;;  %v683_v3 = vld [vmem:[%s4394_s5 + $0xd0] sm:$0xff]  ;;  %v661_v5 = vld [vmem:[%s4394_s5 + $0x20] sm:$0xff] }
  0x15   :  { %v684_v4 = vld [vmem:[%s4394_s5 + $0xd8] sm:$0xff]  ;;  %v2764_v6 = vld [vmem:[%s4393_s2 + $0x20] sm:$0xff]  ;;  %v662_v7 = vld [vmem:[%s4394_s5 + $0x28] sm:$0xff] }
  0x16   :  { %v681_v8 = vld [vmem:[%s4394_s5 + $0xc0] sm:$0xff]  ;;  %v682_v9 = vld [vmem:[%s4394_s5 + $0xc8] sm:$0xff]  ;;  %v659_v10 = vld [vmem:[%s4394_s5 + $0x10] sm:$0xff] }
  0x17   :  { %v660_v11 = vld [vmem:[%s4394_s5 + $0x18] sm:$0xff]  ;;  %v679_v12 = vld [vmem:[%s4394_s5 + $0xb0] sm:$0xff]  ;;  %v2765_v13 = vld [vmem:[%s4393_s2 + $0x28] sm:$0xff] }
  0x18   :  { %v680_v14 = vld [vmem:[%s4394_s5 + $0xb8] sm:$0xff]  ;;  %v657_v15 = vld [vmem:[%s4394_s5] sm:$0xff]  ;;  %v675_v21 = vld [vmem:[%s4394_s5 + $0x90] sm:$0xff] }
  0x19   :  { %v1519_v36 = vld [vmem:[%s4395_s7 + $0x60] sm:$0xff] }
  0x1a   :  { %156 = vperm.xlu0 %2865, %v94_v17   ;;  %141 = vperm.xlu1 %2866, %v91_v18   ;;  %v658_v17 = vld [vmem:[%s4394_s5 + $0x8] sm:$0xff]  ;;  %v677_v18 = vld [vmem:[%s4394_s5 + $0xa0] sm:$0xff] }
  0x1b   :  { %475 = vmatpush.bf16.xpose.msra.mxu0 %v461_v19 }
  0x1c   :  { %146 = vperm.xlu2 %2867, %v92_v20   ;;  %v678_v20 = vld [vmem:[%s4394_s5 + $0xa8] sm:$0xff] }
  0x22   :  { %131 = vperm.xlu0 %2865, %v89_v22   ;;  %136 = vperm.xlu1 %2866, %v90_v23   ;;  %v2766_v22 = vld [vmem:[%s4393_s2 + $0x30] sm:$0xff]  ;;  %v676_v23 = vld [vmem:[%s4394_s5 + $0x98] sm:$0xff] }
  0x23   :  { %476 = vmatpush.bf16.xpose.msra.mxu0 %v458_v24 }
  0x24   :  { %121 = vperm.xlu2 %2867, %v87_v25   ;;  %v673_v25 = vld [vmem:[%s4394_s5 + $0x80] sm:$0xff] }
  0x2a   :  { %126 = vperm.xlu0 %2865, %v88_v27   ;;  %271 = vperm.xlu1 %2866, %v117_v28   ;;  %v674_v27 = vld [vmem:[%s4394_s5 + $0x88] sm:$0xff]  ;;  %v1521_v28 = vld [vmem:[%s4395_s7 + $0x70] sm:$0xff] }
  0x2b   :  { %477 = vmatpush.bf16.xpose.msra.mxu0 %v455_v29 }
  0x2c   :  { %276 = vperm.xlu2 %2867, %v118_v30   ;;  %v1522_v30 = vld [vmem:[%s4395_s7 + $0x78] sm:$0xff] }
  0x32   :  { %261 = vperm.xlu0 %2865, %v115_v32   ;;  %266 = vperm.xlu1 %2866, %v116_v33   ;;  %v1537_v32 = vld [vmem:[%s4395_s7 + $0xf0] sm:$0xff]  ;;  %v2767_v33 = vld [vmem:[%s4393_s2 + $0x38] sm:$0xff] }
  0x33   :  { %478 = vmatpush.bf16.xpose.msra.mxu0 %v452_v34  ;;  %v1538_v34 = vld [vmem:[%s4395_s7 + $0xf8] sm:$0xff] }
  0x34   :  { %251 = vperm.xlu2 %2867, %v113_v35  }
  0x3a   :  { %256 = vperm.xlu0 %2865, %v114_v37   ;;  %241 = vperm.xlu1 %2866, %v111_v38   ;;  %v1520_v38 = vld [vmem:[%s4395_s7 + $0x68] sm:$0xff] }
  0x3b   :  { %479 = vmatpush.bf16.xpose.msra.mxu0 %v449_v39  ;;  %v1535_v39 = vld [vmem:[%s4395_s7 + $0xe0] sm:$0xff] }
  0x3c   :  { %246 = vperm.xlu2 %2867, %v112_v40  }
  0x42   :  { %231 = vperm.xlu0 %2865, %v109_v41   ;;  %236 = vperm.xlu1 %2866, %v110_v43  }
  0x43   :  { %2480 = vmatmul.msk.bf16.vlgmr.msra.gmra.mxu0 %vm399_vm0, %v2760_v42  ;;  %v1536_v42 = vld [vmem:[%s4395_s7 + $0xe8] sm:$0xff] }
  0x44   :  { %221 = vperm.xlu2 %2867, %v107_v44   ;;  %v1517_v44 = vld [vmem:[%s4395_s7 + $0x50] sm:$0xff] }
  0x4a   :  { %226 = vperm.xlu0 %2865, %v108_v45   ;;  %211 = vperm.xlu1 %2866, %v105_v46   ;;  %v2768_v45 = vld [vmem:[%s4393_s2 + $0x40] sm:$0xff]  ;;  %v1518_v46 = vld [vmem:[%s4395_s7 + $0x58] sm:$0xff] }
  0x4c   :  { %216 = vperm.xlu2 %2867, %v106_v47  }
  0x52   :  { %201 = vperm.xlu0 %2865, %v103_v48   ;;  %206 = vperm.xlu1 %2866, %v104_v50   ;;  %v1533_v50 = vld [vmem:[%s4395_s7 + $0xd0] sm:$0xff] }
  0x53   :  { %2481 = vmatmul.msk.bf16.gmra.mxu0 %vm399_vm0, %v2761_v49 }
  0x54   :  { %761 = vperm.xlu2 %2867, %v671_v51  }
  0x5a   :  { %766 = vperm.xlu0 %2865, %v672_v52   ;;  %751 = vperm.xlu1 %2866, %v669_v53   ;;  %v1534_v53 = vld [vmem:[%s4395_s7 + $0xd8] sm:$0xff] }
  0x5c   :  { %756 = vperm.xlu2 %2867, %v670_v54   ;;  %v1515_v54 = vld [vmem:[%s4395_s7 + $0x40] sm:$0xff] }
  0x5e   :  { %v3170_v19 = vpop.permute.xlu2 %171 }
  0x62   :  { %741 = vperm.xlu0 %2865, %v667_v55   ;;  %746 = vperm.xlu1 %2866, %v668_v57  }
  0x63   :  { %2482 = vmatmul.msk.bf16.gmra.mxu0 %vm399_vm0, %v2762_v56 }
  0x64   :  { %841 = vperm.xlu2 %2867, %v687_v58  }
  0x66   :  { %v3190_v26 = vpop.permute.xlu2 %176 }
  0x6a   :  { %846 = vperm.xlu0 %2865, %v688_v59   ;;  %731 = vperm.xlu1 %2866, %v665_v60   ;;  %v1516_v60 = vld [vmem:[%s4395_s7 + $0x48] sm:$0xff] }
  0x6c   :  { %736 = vperm.xlu2 %2867, %v666_v61  }
  0x6e   :  { %v3203_v31 = vpop.permute.xlu2 %151 }
  0x72   :  { %831 = vperm.xlu0 %2865, %v685_v62   ;;  %836 = vperm.xlu1 %2866, %v686_v0  }
  0x73   :  { %2483 = vmatmul.msk.bf16.gmra.mxu0 %vm399_vm0, %v2763_v63 }
  0x74   :  { %721 = vperm.xlu2 %2867, %v663_v1   ;;  %v3162_v16 = vpop.permute.xlu0 %191  ;;  %v3214_v35 = vpop.permute.xlu1 %181  ;;  %v1531_v1 = vld [vmem:[%s4395_s7 + $0xc0] sm:$0xff] }
  0x76   :  { %v3228_v40 = vpop.permute.xlu2 %146 }
  0x7a   :  { %726 = vperm.xlu0 %2865, %v664_v2   ;;  %821 = vperm.xlu1 %2866, %v683_v3   ;;  %v2769_v2 = vld [vmem:[%s4393_s2 + $0x48] sm:$0xff] }
  0x7b   :  { %v1532_v3 = vld [vmem:[%s4395_s7 + $0xc8] sm:$0xff] }
  0x7c   :  { %826 = vperm.xlu2 %2867, %v684_v4   ;;  %v3184_v24 = vpop.permute.xlu0 %196  ;;  %v3230_v41 = vpop.permute.xlu1 %186 }
  0x7e   :  { %v122_v48 = vpop.permute.xlu2 %121 }
  0x82   :  { %711 = vperm.xlu0 %2865, %v661_v5   ;;  %716 = vperm.xlu1 %2866, %v662_v7   ;;  %v1513_v7 = vld [vmem:[%s4395_s7 + $0x30] sm:$0xff] }
  0x83   :  { %2484 = vmatmul.msk.bf16.gmra.mxu0 %vm399_vm0, %v2764_v6 }
  0x84   :  { %811 = vperm.xlu2 %2867, %v681_v8   ;;  %v3198_v29 = vpop.permute.xlu0 %161  ;;  %v3248_v51 = vpop.permute.xlu1 %166 }
  0x8a   :  { %816 = vperm.xlu0 %2865, %v682_v9   ;;  %701 = vperm.xlu1 %2866, %v659_v10   ;;  %v1514_v9 = vld [vmem:[%s4395_s7 + $0x38] sm:$0xff]  ;;  %v1529_v10 = vld [vmem:[%s4395_s7 + $0xb0] sm:$0xff] }
  0x8c   :  { %706 = vperm.xlu2 %2867, %v660_v11   ;;  %v3220_v37 = vpop.permute.xlu0 %156  ;;  %v142_v62 = vpop.permute.xlu1 %141 }
  0x92   :  { %801 = vperm.xlu0 %2865, %v679_v12   ;;  %806 = vperm.xlu1 %2866, %v680_v14   ;;  %v17_v14 = vstv %s4396_s9 }
  0x93   :  { %2485 = vmatmul.msk.bf16.gmra.mxu0 %vm399_vm0, %v2765_v13  ;;  %18 = vst [vmem:[#allocation2] sm:$0x1] %v17_v14  ;;  %v2774_v14 = vld [vmem:[%s4393_s2 + $0x70] sm:$0xff] }
  0x94   :  { %691 = vperm.xlu2 %2867, %v657_v15   ;;  %v132_v43 = vpop.permute.xlu0 %131  ;;  %v137_v11 = vpop.permute.xlu1 %136 }
  0x9a   :  { %696 = vperm.xlu0 %2865, %v658_v17   ;;  %791 = vperm.xlu1 %2866, %v677_v18   ;;  %v1530_v18 = vld [vmem:[%s4395_s7 + $0xb8] sm:$0xff] }
  0x9c   :  { %796 = vperm.xlu2 %2867, %v678_v20   ;;  %v127_v55 = vpop.permute.xlu0 %126 }
  0xa2   :  { %781 = vperm.xlu0 %2865, %v675_v21   ;;  %786 = vperm.xlu1 %2866, %v676_v23   ;;  %v1511_v23 = vld [vmem:[%s4395_s7 + $0x20] sm:$0xff] }
  0xa3   :  { %2486 = vmatmul.msk.bf16.gmra.mxu0 %vm399_vm0, %v2766_v22 }
  0xa4   :  { %771 = vperm.xlu2 %2867, %v673_v25   ;;  %v2770_v25 = vld [vmem:[%s4393_s2 + $0x50] sm:$0xff] }
  0xaa   :  { %776 = vperm.xlu0 %2865, %v674_v27   ;;  %1611 = vperm.xlu1 %2866, %v1521_v28   ;;  %v1512_v27 = vld [vmem:[%s4395_s7 + $0x28] sm:$0xff] }
  0xac   :  { %1616 = vperm.xlu2 %2867, %v1522_v30  }
  0xb2   :  { %1691 = vperm.xlu0 %2865, %v1537_v32   ;;  %1696 = vperm.xlu1 %2866, %v1538_v34  }
  0xb3   :  { %2487 = vmatmul.msk.bf16.gmra.mxu0 %vm399_vm0, %v2767_v33  ;;  %v1527_v33 = vld [vmem:[%s4395_s7 + $0xa0] sm:$0xff] }
  0xb4   :  { %1601 = vperm.xlu2 %2867, %v1519_v36   ;;  %v1528_v36 = vld [vmem:[%s4395_s7 + $0xa8] sm:$0xff] }
  0xba   :  { %1606 = vperm.xlu0 %2865, %v1520_v38   ;;  %1681 = vperm.xlu1 %2866, %v1535_v39   ;;  %v1509_v38 = vld [vmem:[%s4395_s7 + $0x10] sm:$0xff] }
  0xbc   :  { %1686 = vperm.xlu2 %2867, %v1536_v42  }
  0xc0   :  { %v481_v47 = vpop.f32.mrf.mxu0 }
  0xc1   :  { %v482_v49 = vadd.f32 %v481_v47, %v122_v48 }
  0xc2   :  { %1591 = vperm.xlu0 %2865, %v1517_v44   ;;  %1596 = vperm.xlu1 %2866, %v1518_v46  }
  0xc3   :  { %2488 = vmatmul.msk.bf16.gmra.mxu0 %vm399_vm0, %v2768_v45  ;;  %v561_v52 = vmax.f32 %v482_v49, 0.0  ;;  %v1510_v45 = vld [vmem:[%s4395_s7 + $0x18] sm:$0xff] }
  0xc4   :  { %1671 = vperm.xlu2 %2867, %v1533_v50   ;;  %v2771_v49 = vld [vmem:[%s4393_s2 + $0x58] sm:$0xff] }
  0xc5   :  { %v3256_v58 = vpack.c.bf16 %v561_v52, %v561_v52  ;;  %v1526_v50 = vld [vmem:[%s4395_s7 + $0x98] sm:$0xff] }
  0xc7   :  { %v1041_v63 = vunpack.c.l.b16 %v3256_v58 }
  0xc8   :  { %v483_v56 = vpop.f32.mrf.mxu0 }
  0xc9   :  { %v484_v57 = vadd.f32 %v483_v56, %v127_v55  ;;  %v1507_v55 = vld [vmem:[%s4395_s7] sm:$0xff] }
  0xca   :  { %1676 = vperm.xlu0 %2865, %v1534_v53   ;;  %1581 = vperm.xlu1 %2866, %v1515_v54  }
  0xcb   :  { %v562_v59 = vmax.f32 %v484_v57, 0.0  ;;  %v1508_v57 = vld [vmem:[%s4395_s7 + $0x8] sm:$0xff] }
  0xcc   :  { %1586 = vperm.xlu2 %2867, %v1516_v60  }
  0xcd   :  { %v3261_v61 = vpack.c.bf16 %v562_v59, %v562_v59  ;;  %v1523_v59 = vld [vmem:[%s4395_s7 + $0x80] sm:$0xff] }
  0xcf   :  { %v1042_v0 = vunpack.c.l.b16 %v3261_v61 }
  0xd0   :  { %v486_v4 = vpop.f32.mrf.mxu0 }
  0xd1   :  { %v3274_v5 = vpack.c.b16 %v1042_v0, %v1041_v63  ;;  %v487_v6 = vadd.f32 %v486_v4, %v132_v43  ;;  %v1524_v0 = vld [vmem:[%s4395_s7 + $0x88] sm:$0xff] }
  0xd2   :  { %1661 = vperm.xlu0 %2865, %v1531_v1   ;;  %1666 = vperm.xlu1 %2866, %v1532_v3   ;;  %v2310_v4 = vld [vmem:[#allocation2] sm:$0x1] }
  0xd3   :  { %2489 = vmatmul.msk.bf16.gmra.mxu0 %vm399_vm0, %v2769_v2  ;;  %v563_v8 = vmax.f32 %v487_v6, 0.0 }
  0xd4   :  { %1571 = vperm.xlu2 %2867, %v1513_v7  }
  0xd5   :  { %v3289_v15 = vpack.c.bf16 %v563_v8, %v563_v8 }
  0xd7   :  { %v1043_v21 = vunpack.c.l.b16 %v3289_v15 }
  0xd8   :  { %v488_v12 = vpop.f32.mrf.mxu0 }
  0xd9   :  { %v489_v13 = vadd.f32 %v488_v12, %v137_v11  ;;  %v3371_v11 = vpop.permute.xlu1 %271 }
  0xda   :  { %1576 = vperm.xlu0 %2865, %v1514_v9   ;;  %1651 = vperm.xlu1 %2866, %v1529_v10   ;;  %v2773_v9 = vld [vmem:[%s4393_s2 + $0x68] sm:$0xff] }
  0xdb   :  { %v564_v17 = vmax.f32 %v489_v13, 0.0  ;;  %v3373_v13 = vpop.permute.xlu0 %261 }
  0xdc   :  { %1656 = vperm.xlu2 %2867, %v1530_v18  }
  0xdd   :  { %v3294_v20 = vpack.c.bf16 %v564_v17, %v564_v17 }
  0xdf   :  { %v1044_v22 = vunpack.c.l.b16 %v3294_v20 }
  0xe0   :  { %v491_v28 = vpop.f32.mrf.mxu0 }
  0xe1   :  { %v3307_v30 = vpack.c.b16 %v1044_v22, %v1043_v21  ;;  %v492_v32 = vadd.f32 %v491_v28, %v142_v62  ;;  %v3378_v17 = vpop.permute.xlu1 %266  ;;  %v3390_v28 = vpop.permute.xlu2 %276 }
  0xe2   :  { %1561 = vperm.xlu0 %2865, %v1511_v23   ;;  %1566 = vperm.xlu1 %2866, %v1512_v27   ;;  %v2775_v27 = vld [vmem:[%s4393_s2 + $0x78] sm:$0xff] }
  0xe3   :  { %2490 = vmatmul.msk.bf16.gmra.mxu0 %vm399_vm0, %v2770_v25  ;;  %v565_v34 = vmax.f32 %v492_v32, 0.0  ;;  %v3381_v21 = vpop.permute.xlu0 %256 }
  0xe4   :  { %1641 = vperm.xlu2 %2867, %v1527_v33  }
  0xe5   :  { %v3320_v43 = vpack.c.bf16 %v565_v34, %v565_v34 }
  0xe7   :  { %v1045_v47 = vunpack.c.l.b16 %v3320_v43 }
  0xe8   :  { %v493_v39 = vpop.f32.mrf.mxu0 }
  0xe9   :  { %v494_v42 = vadd.f32 %v493_v39, %v3228_v40  ;;  %v1525_v40 = vld [vmem:[%s4395_s7 + $0x90] sm:$0xff]  ;;  %v3383_v23 = vpop.permute.xlu1 %241 }
  0xea   :  { %1646 = vperm.xlu0 %2865, %v1528_v36   ;;  %1551 = vperm.xlu1 %2866, %v1509_v38  }
  0xeb   :  { %v566_v44 = vmax.f32 %v494_v42, 0.0  ;;  %v3385_v25 = vpop.permute.xlu0 %231 }
  0xec   :  { %1556 = vperm.xlu2 %2867, %v1510_v45  }
  0xed   :  { %v3325_v46 = vpack.c.bf16 %v566_v44, %v566_v44 }
  0xef   :  { %v1046_v48 = vunpack.c.l.b16 %v3325_v46 }
  0xf0   :  { %v496_v52 = vpop.f32.mrf.mxu0 }
  0xf1   :  { %v3338_v53 = vpack.c.b16 %v1046_v48, %v1045_v47  ;;  %v497_v54 = vadd.f32 %v496_v52, %v3203_v31  ;;  %v3394_v34 = vpop.permute.xlu1 %236 }
  0xf2   :  { %1631 = vperm.xlu0 %2865, %v1525_v40   ;;  %1636 = vperm.xlu1 %2866, %v1526_v50   ;;  %v3402_v40 = vpop.permute.xlu2 %251 }
  0xf3   :  { %2491 = vmatmul.msk.bf16.gmra.mxu0 %vm399_vm0, %v2771_v49  ;;  %v567_v56 = vmax.f32 %v497_v54, 0.0  ;;  %v3398_v42 = vpop.permute.xlu0 %226 }
  0xf4   :  { %1541 = vperm.xlu2 %2867, %v1507_v55  }
  0xf5   :  { %v3352_v31 = vpack.c.bf16 %v567_v56, %v567_v56 }
  0xf7   :  { %v1047_v2 = vunpack.c.l.b16 %v3352_v31 }
  0xf8   :  { %v498_v60 = vpop.f32.mrf.mxu0 }
  0xf9   :  { %v499_v62 = vadd.f32 %v498_v60, %v3220_v37  ;;  %v2772_v37 = vld [vmem:[%s4393_s2 + $0x60] sm:$0xff]  ;;  %v212_v56 = vpop.permute.xlu1 %211 }
  0xfa   :  { %1546 = vperm.xlu0 %2865, %v1508_v57   ;;  %1621 = vperm.xlu1 %2866, %v1523_v59  }
  0xfb   :  { %v568_v63 = vmax.f32 %v499_v62, 0.0 }
  0xfc   :  { %1626 = vperm.xlu2 %2867, %v1524_v0  }
  0xfd   :  { %v3357_v1 = vpack.c.bf16 %v568_v63, %v568_v63 }
  0xff   :  { %v1048_v3 = vunpack.c.l.b16 %v3357_v1 }
 0x100   :  { %v501_v6 = vpop.f32.mrf.mxu0 }
 0x101   :  { %v3364_v7 = vpack.c.b16 %v1048_v3, %v1047_v2  ;;  %v202_v2 = vpop.permute.xlu0 %201 }
 0x102   :  { %2313 = vperm.xlu0 %2865, %v2310_v4  }
 0x103   :  { %2492 = vmatmul.msk.bf16.gmra.mxu0 %vm399_vm0, %v2772_v37 }
 0x108   :  { %v503_v8 = vpop.f32.mrf.mxu0 }
 0x110   :  { %v506_v10 = vpop.f32.mrf.mxu0 }
 0x113   :  { %2493 = vmatmul.msk.bf16.gmra.mxu0 %vm399_vm0, %v2773_v9 }
 0x118   :  { %v508_v12 = vpop.f32.mrf.mxu0 }
 0x119   :  { %v509_v45 = vadd.f32 %v508_v12, %v3190_v26  ;;  %v502_v26 = vadd.f32 %v501_v6, %v3198_v29  ;;  %v3423_v6 = vpop.permute.xlu2 %246 }
 0x11b   :  { %v569_v3 = vmax.f32 %v502_v26, 0.0 }
 0x11d   :  { %v3428_v12 = vpack.c.bf16 %v569_v3, %v569_v3  ;;  %v2594_v3 = vld [vmem:[%s4397_s4 + $0xc0] sm:$0xf] }
 0x120   :  { %v511_v18 = vpop.f32.mrf.mxu0 }
 0x121   :  { %v512_v38 = vadd.f32 %v511_v18, %v3214_v35  ;;  %v572_v35 = vmax.f32 %v509_v45, 0.0 }
 0x123   :  { %2494 = vmatmul.msk.bf16.gmra.mxu0 %vm399_vm0, %v2774_v14  ;;  %v573_v49 = vmax.f32 %v512_v38, 0.0  ;;  %v3417_v63 = vpack.c.bf16 %v572_v35, %v572_v35  ;;  %v1049_v38 = vunpack.c.l.b16 %v3428_v12 }
 0x125   :  { %v1052_v9 = vunpack.c.l.b16 %v3417_v63 }
 0x128   :  { %v513_v22 = vpop.f32.mrf.mxu0 }
 0x129   :  { %v514_v36 = vadd.f32 %v513_v22, %v3230_v41  ;;  %v504_v41 = vadd.f32 %v503_v8, %v3248_v51  ;;  %v207_v22 = vpop.permute.xlu1 %206 }
 0x12b   :  { %v574_v47 = vmax.f32 %v514_v36, 0.0  ;;  %v570_v62 = vmax.f32 %v504_v41, 0.0 }
 0x12d   :  { %v3408_v54 = vpack.c.bf16 %v574_v47, %v574_v47  ;;  %v3425_v8 = vpack.c.bf16 %v570_v62, %v570_v62 }
 0x12f   :  { %v1054_v51 = vunpack.c.l.b16 %v3408_v54 }
 0x130   :  { %v516_v32 = vpop.f32.mrf.mxu0 }
 0x131   :  { %v517_v33 = vadd.f32 %v516_v32, %v3162_v16  ;;  %v507_v16 = vadd.f32 %v506_v10, %v3170_v19  ;;  %v1050_v32 = vunpack.c.l.b16 %v3425_v8 }
 0x133   :  { %2495 = vmatmul.msk.bf16.gmra.mxu0 %vm399_vm0, %v2775_v27  ;;  %v575_v39 = vmax.f32 %v517_v33, 0.0  ;;  %v571_v57 = vmax.f32 %v507_v16, 0.0  ;;  %v1077_v45 = vpack.c.b16 %v1050_v32, %v1049_v38 }
 0x135   :  { %v3405_v50 = vpack.c.bf16 %v575_v39, %v575_v39  ;;  %v3420_v4 = vpack.c.bf16 %v571_v57, %v571_v57 }
 0x137   :  { %v1055_v59 = vunpack.c.l.b16 %v3405_v50  ;;  %v1051_v14 = vunpack.c.l.b16 %v3420_v4 }
 0x138   :  { %v518_v44 = vpop.f32.mrf.mxu0 }
 0x139   :  { %v519_v48 = vadd.f32 %v518_v44, %v3184_v24  ;;  %v3413_v24 = vpack.c.bf16 %v573_v49, %v573_v49  ;;  %v1078_v33 = vpack.c.b16 %v1052_v9, %v1051_v14 }
 0x13b   :  { %v576_v52 = vmax.f32 %v519_v48, 0.0  ;;  %v1053_v29 = vunpack.c.l.b16 %v3413_v24  ;;  %v222_v48 = vpop.permute.xlu2 %221 }
 0x13d   :  { %v3410_v55 = vpack.c.bf16 %v576_v52, %v576_v52  ;;  %v1079_v10 = vpack.c.b16 %v1054_v51, %v1053_v29  ;;  %v2801_v29 = vld [vmem:[%s4397_s4 + $0xc4] sm:$0xf0] }
 0x13e   :  { %v2595_v14 = vor.u32 %v2801_v29, %v2594_v3 }
 0x13f   :  { %v1056_v19 = vunpack.c.l.b16 %v3410_v55 }
 0x140   :  { %v521_v60 = vpop.f32.mrf.mxu0 }
 0x141   :  { %v1080_v0 = vpack.c.b16 %v1056_v19, %v1055_v59  ;;  %v522_v37 = vadd.f32 %v521_v60, %v202_v2  ;;  %v2498_v19 = vld [vmem:[%s4397_s4] sm:$0xf]  ;;  %v2522_v60 = vld [vmem:[%s4397_s4 + $0x30] sm:$0xf]  ;;  %v2793_v2 = vld [vmem:[%s4397_s4 + $0x84] sm:$0xf0] }
 0x143   :  { %1105 = vmatpush.bf16.msrb.mxu0 %v1080_v0  ;;  %2840 = vmatpush.bf16.msra.mxu1 %v1080_v0  ;;  %v577_v18 = vmax.f32 %v522_v37, 0.0  ;;  %v217_v57 = vpop.permute.xlu2 %216 }
 0x144   :  { %2841 = vmatpush.bf16.msra.mxu2 %v1080_v0  ;;  %2842 = vmatpush.bf16.msra.mxu3 %v1080_v0  ;;  %v2562_v0 = vld [vmem:[%s4397_s4 + $0x80] sm:$0xf] }
 0x145   :  { %v3433_v39 = vpack.c.bf16 %v577_v18, %v577_v18 }
 0x147   :  { %1106 = vmatpush.bf16.msrb.mxu0 %v1079_v10  ;;  %2843 = vmatpush.bf16.msra.mxu1 %v1079_v10  ;;  %v1057_v16 = vunpack.c.l.b16 %v3433_v39 }
 0x148   :  { %2844 = vmatpush.bf16.msra.mxu2 %v1079_v10  ;;  %2845 = vmatpush.bf16.msra.mxu3 %v1079_v10  ;;  %v523_v27 = vpop.f32.mrf.mxu0 }
 0x149   :  { %v524_v36 = vadd.f32 %v523_v27, %v207_v22 }
 0x14b   :  { %v578_v44 = vmax.f32 %v524_v36, 0.0  ;;  %1107 = vmatpush.bf16.msrb.mxu0 %v1078_v33  ;;  %2846 = vmatpush.bf16.msra.mxu1 %v1078_v33 }
 0x14c   :  { %2847 = vmatpush.bf16.msra.mxu2 %v1078_v33  ;;  %2848 = vmatpush.bf16.msra.mxu3 %v1078_v33 }
 0x14d   :  { %v3435_v47 = vpack.c.bf16 %v578_v44, %v578_v44 }
 0x14f   :  { %1108 = vmatpush.bf16.msrb.mxu0 %v1077_v45  ;;  %2849 = vmatpush.bf16.msra.mxu1 %v1077_v45  ;;  %v1058_v49 = vunpack.c.l.b16 %v3435_v47 }
 0x150   :  { %2850 = vmatpush.bf16.msra.mxu2 %v1077_v45  ;;  %2851 = vmatpush.bf16.msra.mxu3 %v1077_v45  ;;  %v526_v52 = vpop.f32.mrf.mxu0  ;;  %v2506_v45 = vld [vmem:[%s4397_s4 + $0x10] sm:$0xf] }
 0x151   :  { %v3439_v41 = vpack.c.b16 %v1058_v49, %v1057_v16  ;;  %v527_v35 = vadd.f32 %v526_v52, %v212_v56  ;;  %v2530_v16 = vld [vmem:[%s4397_s4 + $0x40] sm:$0xf]  ;;  %v2785_v52 = vld [vmem:[%s4397_s4 + $0x44] sm:$0xf0] }
 0x153   :  { %1109 = vmatpush.bf16.msrb.mxu0 %v3364_v7  ;;  %2852 = vmatpush.bf16.msra.mxu1 %v3364_v7  ;;  %v579_v26 = vmax.f32 %v527_v35, 0.0  ;;  %v2795_v35 = vld [vmem:[%s4397_s4 + $0x94] sm:$0xf0] }
 0x154   :  { %2853 = vmatpush.bf16.msra.mxu2 %v3364_v7  ;;  %2854 = vmatpush.bf16.msra.mxu3 %v3364_v7  ;;  %v2777_v7 = vld [vmem:[%s4397_s4 + $0x4] sm:$0xf0] }
 0x155   :  { %v3458_v62 = vpack.c.bf16 %v579_v26, %v579_v26  ;;  %v2499_v9 = vor.u32 %v2777_v7, %v2498_v19  ;;  %v2602_v26 = vld [vmem:[%s4397_s4 + $0xd0] sm:$0xf]  ;;  %v2531_v19 = vor.u32 %v2785_v52, %v2530_v16 }
 0x157   :  { %1110 = vmatpush.bf16.msrb.mxu0 %v3338_v53  ;;  %2855 = vmatpush.bf16.msra.mxu1 %v3338_v53  ;;  %v1059_v18 = vunpack.c.l.b16 %v3458_v62 }
 0x158   :  { %2856 = vmatpush.bf16.msra.mxu2 %v3338_v53  ;;  %2857 = vmatpush.bf16.msra.mxu3 %v3338_v53  ;;  %v528_v59 = vpop.f32.mrf.mxu0  ;;  %v2783_v53 = vld [vmem:[%s4397_s4 + $0x34] sm:$0xf0] }
 0x159   :  { %v529_v56 = vadd.f32 %v528_v59, %v217_v57  ;;  %v2523_v10 = vor.u32 %v2783_v53, %v2522_v60  ;;  %v2803_v57 = vld [vmem:[%s4397_s4 + $0xd4] sm:$0xf0] }
 0x15a   :  { %v2603_v60 = vor.u32 %v2803_v57, %v2602_v26 }
 0x15b   :  { %v580_v51 = vmax.f32 %v529_v56, 0.0  ;;  %1111 = vmatpush.bf16.msrb.mxu0 %v3307_v30  ;;  %2858 = vmatpush.bf16.msra.mxu1 %v3307_v30 }
 0x15c   :  { %2859 = vmatpush.bf16.msra.mxu2 %v3307_v30  ;;  %2860 = vmatpush.bf16.msra.mxu3 %v3307_v30  ;;  %v2563_v30 = vor.u32 %v2793_v2, %v2562_v0 }
 0x15d   :  { %v3479_v37 = vpack.c.bf16 %v580_v51, %v580_v51 }
 0x15f   :  { %1112 = vmatpush.bf16.msrb.mxu0 %v3274_v5  ;;  %2861 = vmatpush.bf16.msra.mxu1 %v3274_v5  ;;  %v1060_v22 = vunpack.c.l.b16 %v3479_v37 }
 0x160   :  { %2862 = vmatpush.bf16.msra.mxu2 %v3274_v5  ;;  %2863 = vmatpush.bf16.msra.mxu3 %v3274_v5  ;;  %v531_v27 = vpop.f32.mrf.mxu0  ;;  %v2779_v5 = vld [vmem:[%s4397_s4 + $0x14] sm:$0xf0] }
 0x161   :  { %v3487_v32 = vpack.c.b16 %v1060_v22, %v1059_v18  ;;  %v532_v33 = vadd.f32 %v531_v27, %v222_v48  ;;  %v2507_v56 = vor.u32 %v2779_v5, %v2506_v45  ;;  %v2538_v18 = vld [vmem:[%s4397_s4 + $0x50] sm:$0xf]  ;;  %v2787_v27 = vld [vmem:[%s4397_s4 + $0x54] sm:$0xf0] }
 0x162   :  { %1113 = vmatmul.bf16.vlgmr.msrb.gmra.mxu0 %v2499_v9  ;;  %1128 = vmatmul.bf16.vlgmr.msra.gmra.mxu1 %v2523_v10  ;;  %v2539_v5 = vor.u32 %v2787_v27, %v2538_v18 }
 0x163   :  { %1153 = vmatmul.bf16.vlgmr.msra.gmra.mxu2 %v2563_v30  ;;  %1173 = vmatmul.bf16.vlgmr.msra.gmra.mxu3 %v2595_v14  ;;  %v581_v36 = vmax.f32 %v532_v33, 0.0  ;;  %v2514_v30 = vld [vmem:[%s4397_s4 + $0x20] sm:$0xf]  ;;  %v2781_v14 = vld [vmem:[%s4397_s4 + $0x24] sm:$0xf0] }
 0x164   :  { %v2797_v33 = vld [vmem:[%s4397_s4 + $0xa4] sm:$0xf0]  ;;  %v2515_v45 = vor.u32 %v2781_v14, %v2514_v30  ;;  %v2554_v30 = vld [vmem:[%s4397_s4 + $0x70] sm:$0xf]  ;;  %v2791_v14 = vld [vmem:[%s4397_s4 + $0x74] sm:$0xf0] }
 0x165   :  { %v3499_v49 = vpack.c.bf16 %v581_v36, %v581_v36  ;;  %v2610_v36 = vld [vmem:[%s4397_s4 + $0xe0] sm:$0xf]  ;;  %v2555_v18 = vor.u32 %v2791_v14, %v2554_v30 }
 0x167   :  { %v1061_v51 = vunpack.c.l.b16 %v3499_v49 }
 0x168   :  { %v533_v38 = vpop.f32.mrf.mxu0 }
 0x169   :  { %v534_v44 = vadd.f32 %v533_v38, %v3398_v42  ;;  %v2570_v42 = vld [vmem:[%s4397_s4 + $0x90] sm:$0xf]  ;;  %v2805_v38 = vld [vmem:[%s4397_s4 + $0xe4] sm:$0xf0] }
 0x16a   :  { %v2571_v7 = vor.u32 %v2795_v35, %v2570_v42 }
 0x16b   :  { %v582_v48 = vmax.f32 %v534_v44, 0.0 }
 0x16d   :  { %v3516_v59 = vpack.c.bf16 %v582_v48, %v582_v48  ;;  %v2611_v48 = vor.u32 %v2805_v38, %v2610_v36 }
 0x16f   :  { %v1062_v53 = vunpack.c.l.b16 %v3516_v59 }
 0x170   :  { %v536_v0 = vpop.f32.mrf.mxu0 }
 0x171   :  { %v3520_v2 = vpack.c.b16 %v1062_v53, %v1061_v51  ;;  %v537_v3 = vadd.f32 %v536_v0, %v3385_v25  ;;  %v2618_v51 = vld [vmem:[%s4397_s4 + $0xf0] sm:$0xf]  ;;  %v2807_v53 = vld [vmem:[%s4397_s4 + $0xf4] sm:$0xf0] }
 0x172   :  { %1118 = vmatmul.bf16.gmra.mxu0 %v2507_v56  ;;  %1133 = vmatmul.bf16.gmra.mxu1 %v2531_v19  ;;  %v2546_v56 = vld [vmem:[%s4397_s4 + $0x60] sm:$0xf]  ;;  %v2789_v19 = vld [vmem:[%s4397_s4 + $0x64] sm:$0xf0] }
 0x173   :  { %1158 = vmatmul.bf16.gmra.mxu2 %v2571_v7  ;;  %1178 = vmatmul.bf16.gmra.mxu3 %v2603_v60  ;;  %v583_v29 = vmax.f32 %v537_v3, 0.0  ;;  %v2586_v7 = vld [vmem:[%s4397_s4 + $0xb0] sm:$0xf]  ;;  %v2799_v60 = vld [vmem:[%s4397_s4 + $0xb4] sm:$0xf0]  ;;  %v2547_v0 = vor.u32 %v2789_v19, %v2546_v56 }
 0x174   :  { %v2587_v3 = vor.u32 %v2799_v60, %v2586_v7 }
 0x175   :  { %v3533_v22 = vpack.c.bf16 %v583_v29, %v583_v29  ;;  %v2619_v29 = vor.u32 %v2807_v53, %v2618_v51 }
 0x177   :  { %4423 = vst [vmem:[#allocation3_spill] sm:$0xff] %v3533_v22  ;;  %v1063_v52 = vunpack.c.l.b16 %v3533_v22 }
 0x178   :  { %v538_v9 = vpop.f32.mrf.mxu0 }
 0x179   :  { %v539_v10 = vadd.f32 %v538_v9, %v3394_v34  ;;  %v2578_v34 = vld [vmem:[%s4397_s4 + $0xa0] sm:$0xf] }
 0x17a   :  { %v2579_v16 = vor.u32 %v2797_v33, %v2578_v34 }
 0x17b   :  { %v584_v25 = vmax.f32 %v539_v10, 0.0 }
 0x17d   :  { %v3550_v44 = vpack.c.bf16 %v584_v25, %v584_v25 }
 0x17f   :  { %4424 = vst [vmem:[#allocation4_spill] sm:$0xff] %v3550_v44  ;;  %v1064_v42 = vunpack.c.l.b16 %v3550_v44 }
 0x180   :  { %v541_v35 = vpop.f32.mrf.mxu0 }
 0x181   :  { %v3554_v26 = vpack.c.b16 %v1064_v42, %v1063_v52 }
 0x182   :  { %1123 = vmatmul.bf16.gmra.mxu0 %v2515_v45  ;;  %1138 = vmatmul.bf16.gmra.mxu1 %v2539_v5 }
 0x183   :  { %1163 = vmatmul.bf16.gmra.mxu2 %v2579_v16  ;;  %1183 = vmatmul.bf16.gmra.mxu3 %v2611_v48 }
 0x188   :  { %v543_v57 = vpop.f32.mrf.mxu0 }
 0x189   :  { %v544_v60 = vadd.f32 %v543_v57, %v3423_v6 }
 0x190   :  { %v546_v9 = vpop.f32.mrf.mxu0 }
 0x191   :  { %v547_v42 = vadd.f32 %v546_v9, %v3402_v40 }
 0x192   :  { %1143 = vmatmul.bf16.gmra.mxu1 %v2547_v0  ;;  %v586_v0 = vmax.f32 %v544_v60, 0.0  ;;  %v3644_v60 = vpop.permute.xlu0 %766 }
 0x193   :  { %1168 = vmatmul.bf16.gmra.mxu2 %v2587_v3  ;;  %1188 = vmatmul.bf16.gmra.mxu3 %v2619_v29  ;;  %v587_v53 = vmax.f32 %v547_v42, 0.0 }
 0x195   :  { %v3601_v9 = vpack.c.bf16 %v587_v53, %v587_v53 }
 0x197   :  { %4430 = vst [vmem:[#allocation10_spill] sm:$0xff] %v3601_v9 }
 0x198   :  { %v548_v10 = vpop.f32.mrf.mxu0 }
 0x199   :  { %v549_v16 = vadd.f32 %v548_v10, %v3381_v21 }
 0x1a0   :  { %v551_v25 = vpop.f32.mrf.mxu0 }
 0x1a1   :  { %v552_v38 = vadd.f32 %v551_v25, %v3373_v13  ;;  %v542_v13 = vadd.f32 %v541_v35, %v3383_v23  ;;  %v3604_v23 = vpack.c.bf16 %v586_v0, %v586_v0  ;;  %v3656_v0 = vpop.permute.xlu0 %741 }
 0x1a2   :  { %1148 = vmatmul.bf16.gmra.mxu1 %v2555_v18  ;;  %v1067_v18 = vunpack.c.l.b16 %v3601_v9 }
 0x1a3   :  { %v589_v56 = vmax.f32 %v552_v38, 0.0  ;;  %v585_v57 = vmax.f32 %v542_v13, 0.0  ;;  %4431 = vst [vmem:[#allocation11_spill] sm:$0xff] %v3604_v23  ;;  %v2500_v38 = vld [vmem:[%s4397_s4 + $0x8] sm:$0xf0] }
 0x1a4   :  { %v2532_v13 = vld [vmem:[%s4397_s4 + $0x48] sm:$0xf0] }
 0x1a5   :  { %v3594_v21 = vpack.c.bf16 %v589_v56, %v589_v56  ;;  %v3607_v14 = vpack.c.bf16 %v585_v57, %v585_v57  ;;  %v3640_v56 = vpop.permute.xlu2 %761  ;;  %v2786_v57 = vld [vmem:[%s4397_s4 + $0x54] sm:$0xf] }
 0x1a7   :  { %4428 = vst [vmem:[#allocation8_spill] sm:$0xff] %v3594_v21  ;;  %v1069_v10 = vunpack.c.l.b16 %v3594_v21 }
 0x1a8   :  { %v553_v27 = vpop.f32.mrf.mxu0  ;;  %4432 = vst [vmem:[#allocation12_spill] sm:$0xff] %v3607_v14 }
 0x1a9   :  { %v554_v36 = vadd.f32 %v553_v27, %v3378_v17  ;;  %v1066_v27 = vunpack.c.l.b16 %v3604_v23  ;;  %v2794_v23 = vld [vmem:[%s4397_s4 + $0x94] sm:$0xf] }
 0x1ab   :  { %v590_v48 = vmax.f32 %v554_v36, 0.0  ;;  %v2776_v36 = vld [vmem:[%s4397_s4 + $0x4] sm:$0xf] }
 0x1ad   :  { %v3589_v51 = vpack.c.bf16 %v590_v48, %v590_v48  ;;  %v2782_v48 = vld [vmem:[%s4397_s4 + $0x34] sm:$0xf]  ;;  %v3652_v53 = vpop.permute.xlu2 %756 }
 0x1af   :  { %4426 = vst [vmem:[#allocation6_spill] sm:$0xff] %v3589_v51  ;;  %v1070_v6 = vunpack.c.l.b16 %v3589_v51 }
 0x1b0   :  { %v556_v34 = vpop.f32.mrf.mxu0 }
 0x1b1   :  { %v557_v33 = vadd.f32 %v556_v34, %v3371_v11  ;;  %v588_v11 = vmax.f32 %v549_v16, 0.0  ;;  %v1087_v35 = vpack.c.b16 %v1070_v6, %v1069_v10  ;;  %v1065_v34 = vunpack.c.l.b16 %v3607_v14  ;;  %v2516_v16 = vld [vmem:[%s4397_s4 + $0x28] sm:$0xf0]  ;;  %v2540_v10 = vld [vmem:[%s4397_s4 + $0x58] sm:$0xf0] }
 0x1b2   :  { %v1380_v14 = vunpack.c.l.bf16 %v3261_v61  ;;  %v2796_v61 = vld [vmem:[%s4397_s4 + $0xa4] sm:$0xf] }
 0x1b3   :  { %v591_v45 = vmax.f32 %v557_v33, 0.0  ;;  %v3598_v3 = vpack.c.bf16 %v588_v11, %v588_v11  ;;  %v1085_v33 = vpack.c.b16 %v1066_v27, %v1065_v34  ;;  %v2784_v11 = vld [vmem:[%s4397_s4 + $0x44] sm:$0xf]  ;;  %v3674_v27 = vpop.permute.xlu1 %751 }
 0x1b5   :  { %v3586_v19 = vpack.c.bf16 %v591_v45, %v591_v45  ;;  %4429 = vst [vmem:[#allocation9_spill] sm:$0xff] %v3598_v3  ;;  %v1068_v30 = vunpack.c.l.b16 %v3598_v3  ;;  %v2503_v45 = vor.u32 %v2776_v36, %v2500_v38  ;;  %v2788_v36 = vld [vmem:[%s4397_s4 + $0x64] sm:$0xf]  ;;  %v2548_v38 = vld [vmem:[%s4397_s4 + $0x68] sm:$0xf0] }
 0x1b7   :  { %4425 = vst [vmem:[#allocation5_spill] sm:$0xff] %v3586_v19  ;;  %v1086_v25 = vpack.c.b16 %v1068_v30, %v1067_v18  ;;  %v3668_v30 = vpop.permute.xlu0 %846 }
 0x1b8   :  { %v558_v5 = vpop.f32.mrf.mxu0  ;;  %4434 = vst [vmem:[#allocation14_spill] sm:$0xff] %v3668_v30 }
 0x1b9   :  { %v559_v52 = vadd.f32 %v558_v5, %v3390_v28  ;;  %v1071_v28 = vunpack.c.l.b16 %v3586_v19  ;;  %v2780_v5 = vld [vmem:[%s4397_s4 + $0x24] sm:$0xf] }
 0x1bb   :  { %v592_v7 = vmax.f32 %v559_v52, 0.0  ;;  %v2524_v52 = vld [vmem:[%s4397_s4 + $0x38] sm:$0xf0] }
 0x1bc   :  { %v2527_v42 = vor.u32 %v2782_v48, %v2524_v52  ;;  %v2790_v48 = vld [vmem:[%s4397_s4 + $0x74] sm:$0xf]  ;;  %v2556_v52 = vld [vmem:[%s4397_s4 + $0x78] sm:$0xf0] }
 0x1bd   :  { %v3591_v17 = vpack.c.bf16 %v592_v7, %v592_v7 }
 0x1bf   :  { %4427 = vst [vmem:[#allocation7_spill] sm:$0xff] %v3591_v17  ;;  %v1072_v40 = vunpack.c.l.b16 %v3591_v17  ;;  %v3676_v34 = vpop.permute.xlu0 %831 }
 0x1c0   :  { %4435 = vst [vmem:[#allocation15_spill] sm:$0xff] %v3676_v34 }
 0x1c1   :  { %v1088_v29 = vpack.c.b16 %v1072_v40, %v1071_v28  ;;  %v2535_v28 = vor.u32 %v2784_v11, %v2532_v13  ;;  %v2559_v11 = vor.u32 %v2790_v48, %v2556_v52 }
 0x1c3   :  { %1194 = vmatpush.bf16.msrb.mxu2 %v1088_v29  ;;  %v3658_v29 = vpop.permute.xlu2 %841 }
 0x1c4   :  { %4433 = vst [vmem:[#allocation13_spill] sm:$0xff] %v3658_v29 }
 0x1c7   :  { %1195 = vmatpush.bf16.msrb.mxu2 %v1087_v35  ;;  %v2543_v35 = vor.u32 %v2786_v57, %v2540_v10 }
 0x1cb   :  { %1196 = vmatpush.bf16.msrb.mxu2 %v1086_v25  ;;  %v3670_v18 = vpop.permute.xlu2 %736 }
 0x1cf   :  { %1197 = vmatpush.bf16.msrb.mxu2 %v1085_v33 }
 0x1d3   :  { %1198 = vmatpush.bf16.msrb.mxu2 %v3554_v26  ;;  %v2778_v26 = vld [vmem:[%s4397_s4 + $0x14] sm:$0xf]  ;;  %v3678_v33 = vpop.permute.xlu2 %721 }
 0x1d7   :  { %1199 = vmatpush.bf16.msrb.mxu2 %v3520_v2 }
 0x1db   :  { %1200 = vmatpush.bf16.msrb.mxu2 %v3487_v32  ;;  %v2508_v32 = vld [vmem:[%s4397_s4 + $0x18] sm:$0xf0] }
 0x1dc   :  { %v2511_v2 = vor.u32 %v2778_v26, %v2508_v32  ;;  %v3688_v32 = vpop.permute.xlu1 %746 }
 0x1df   :  { %1201 = vmatpush.bf16.msrb.mxu2 %v3439_v41  ;;  %v2519_v41 = vor.u32 %v2780_v5, %v2516_v16  ;;  %v3692_v5 = vpop.permute.xlu2 %826 }
 0x1e0   :  { %4436 = vst [vmem:[#allocation16_spill] sm:$0xff] %v3692_v5 }
 0x1e2   :  { %1202 = vmatmul.bf16.vlgmr.msrb.gmra.mxu2 %v2503_v45  ;;  %v2551_v45 = vor.u32 %v2788_v36, %v2548_v38  ;;  %v2792_v38 = vld [vmem:[%s4397_s4 + $0x84] sm:$0xf] }
 0x1e6   :  { %v3642_v7 = vpop.f32.mrf.mxu2 }
 0x1e7   :  { %v3706_v13 = vpop.permute.xlu2 %811 }
 0x1e8   :  { %4437 = vst [vmem:[#allocation17_spill] sm:$0xff] %v3706_v13 }
 0x1ee   :  { %v3654_v40 = vpop.f32.mrf.mxu2 }
 0x1ef   :  { %v707_v36 = vpop.permute.xlu2 %706 }
 0x1f2   :  { %1207 = vmatmul.bf16.gmra.mxu2 %v2511_v2  ;;  %v3690_v2 = vpop.permute.xlu0 %726 }
 0x1f6   :  { %v3660_v6 = vpop.f32.mrf.mxu2 }
 0x1f7   :  { %v692_v30 = vpop.permute.xlu2 %691 }
 0x1fe   :  { %v3672_v25 = vpop.f32.mrf.mxu2 }
 0x202   :  { %1212 = vmatmul.bf16.gmra.mxu2 %v2519_v41  ;;  %v3696_v41 = vpop.permute.xlu1 %731 }
 0x206   :  { %v3686_v26 = vpop.f32.mrf.mxu2 }
 0x20a   :  { %v3710_v57 = vpop.permute.xlu1 %836 }
 0x20b   :  { %4439 = vst [vmem:[#allocation19_spill] sm:$0xff] %v3710_v57 }
 0x20e   :  { %v3694_v16 = vpop.f32.mrf.mxu2 }
 0x212   :  { %1217 = vmatmul.bf16.gmra.mxu2 %v2527_v42  ;;  %v3704_v42 = vpop.permute.xlu0 %711 }
 0x21a   :  { %v3712_v10 = vpop.permute.xlu0 %816 }
 0x21b   :  { %4440 = vst [vmem:[#allocation20_spill] sm:$0xff] %v3712_v10 }
 0x222   :  { %1222 = vmatmul.bf16.gmra.mxu2 %v2535_v28  ;;  %v3708_v28 = vpop.f32.mrf.mxu2  ;;  %v3724_v17 = vpop.permute.xlu0 %801 }
 0x223   :  { %4438 = vst [vmem:[#allocation18_spill] sm:$0xff] %v3708_v28 }
 0x224   :  { %4443 = vst [vmem:[#allocation23_spill] sm:$0xff] %v3724_v17 }
 0x22a   :  { %v3720_v48 = vpop.f32.mrf.mxu2  ;;  %v697_v9 = vpop.permute.xlu0 %696 }
 0x22b   :  { %4441 = vst [vmem:[#allocation21_spill] sm:$0xff] %v3720_v48 }
 0x232   :  { %1227 = vmatmul.bf16.gmra.mxu2 %v2543_v35  ;;  %v1114_v35 = vpop.f32.mrf.mxu0 }
 0x233   :  { %v1115_v29 = vadd.f32 %v1114_v35, %v692_v30 }
 0x23a   :  { %v1116_v19 = vpop.f32.mrf.mxu0 }
 0x242   :  { %1232 = vmatmul.bf16.gmra.mxu2 %v2551_v45  ;;  %v2564_v45 = vld [vmem:[%s4397_s4 + $0x88] sm:$0xf0]  ;;  %v1119_v5 = vpop.f32.mrf.mxu0 }
 0x243   :  { %v2567_v52 = vor.u32 %v2792_v38, %v2564_v45  ;;  %v2572_v38 = vld [vmem:[%s4397_s4 + $0x98] sm:$0xf0]  ;;  %v1379_v45 = vunpack.c.l.bf16 %v3256_v58 }
 0x24a   :  { %v1121_v48 = vpop.f32.mrf.mxu0 }
 0x252   :  { %1237 = vmatmul.bf16.gmra.mxu2 %v2559_v11  ;;  %v3722_v11 = vpop.permute.xlu1 %821 }
 0x253   :  { %4442 = vst [vmem:[#allocation22_spill] sm:$0xff] %v3722_v11 }
 0x25a   :  { %v717_v34 = vpop.permute.xlu1 %716 }
 0x262   :  { %1242 = vmatmul.bf16.gmra.mxu2 %v2567_v52  ;;  %v1117_v52 = vadd.f32 %v1116_v19, %v697_v9  ;;  %v702_v10 = vpop.permute.xlu1 %701 }
 0x263   :  { %v1120_v13 = vadd.f32 %v1119_v5, %v702_v10  ;;  %v2580_v5 = vld [vmem:[%s4397_s4 + $0xa8] sm:$0xf0]  ;;  %v1381_v10 = vunpack.c.l.bf16 %v3289_v15 }
 0x265   :  { %v1203_v51 = vpop.f32.mrf.mxu2 }
 0x266   :  { %v1204_v21 = vadd.f32 %v1203_v51, %v1115_v29 }
 0x268   :  { %v1283_v57 = vmax.f32 %v1204_v21, 0.0  ;;  %v2575_v21 = vor.u32 %v2794_v23, %v2572_v38 }
 0x26a   :  { %v1315_v3 = vpack.c.bf16 %v1283_v57, %v1283_v57 }
 0x26c   :  { %v1347_v11 = vunpack.c.l.bf16 %v1315_v3 }
 0x26d   :  { %v1205_v30 = vpop.f32.mrf.mxu2 }
 0x26e   :  { %v1411_v35 = vadd.f32 %v1379_v45, %v1347_v11  ;;  %v1206_v51 = vadd.f32 %v1205_v30, %v1117_v52  ;;  %v2583_v45 = vor.u32 %v2796_v61, %v2580_v5  ;;  %v1129_v52 = vpop.f32.mrf.mxu1  ;;  %v1124_v30 = vpop.f32.mrf.mxu0 }
 0x270   :  { %v1284_v29 = vmax.f32 %v1206_v51, 0.0  ;;  %v3734_v28 = vpack.c.bf16 %v1411_v35, %v1411_v35 }
 0x272   :  { %v1316_v57 = vpack.c.bf16 %v1284_v29, %v1284_v29  ;;  %1247 = vmatmul.bf16.gmra.mxu2 %v2575_v21  ;;  %v1891_v23 = vunpack.c.l.b16 %v3734_v28  ;;  %v1382_v21 = vunpack.c.l.bf16 %v3294_v20  ;;  %v1125_v29 = vadd.f32 %v1124_v30, %v3704_v42  ;;  %v2798_v20 = vld [vmem:[%s4397_s4 + $0xb4] sm:$0xf]  ;;  %v2588_v42 = vld [vmem:[%s4397_s4 + $0xb8] sm:$0xf0] }
 0x274   :  { %v1348_v44 = vunpack.c.l.bf16 %v1316_v57 }
 0x275   :  { %v1208_v22 = vpop.f32.mrf.mxu2 }
 0x276   :  { %v1412_v17 = vadd.f32 %v1380_v14, %v1348_v44  ;;  %v1209_v58 = vadd.f32 %v1208_v22, %v1120_v13  ;;  %v1122_v44 = vadd.f32 %v1121_v48, %v707_v36 }
 0x278   :  { %v1285_v19 = vmax.f32 %v1209_v58, 0.0  ;;  %v3736_v3 = vpack.c.bf16 %v1412_v17, %v1412_v17 }
 0x27a   :  { %v1317_v9 = vpack.c.bf16 %v1285_v19, %v1285_v19  ;;  %v1892_v11 = vunpack.c.l.b16 %v3736_v3 }
 0x27c   :  { %v1349_v22 = vunpack.c.l.bf16 %v1317_v9  ;;  %v3747_v14 = vpack.c.b16 %v1892_v11, %v1891_v23  ;;  %v1131_v23 = vpop.f32.mrf.mxu1  ;;  %v1126_v11 = vpop.f32.mrf.mxu0 }
 0x27d   :  { %v1210_v17 = vpop.f32.mrf.mxu2 }
 0x27e   :  { %v1413_v13 = vadd.f32 %v1381_v10, %v1349_v22  ;;  %v1211_v38 = vadd.f32 %v1210_v17, %v1122_v44  ;;  %v1383_v44 = vunpack.c.l.bf16 %v3320_v43  ;;  %v1127_v22 = vadd.f32 %v1126_v11, %v717_v34 }
 0x280   :  { %v1286_v35 = vmax.f32 %v1211_v38, 0.0  ;;  %v3751_v15 = vpack.c.bf16 %v1413_v13, %v1413_v13 }
 0x282   :  { %v1318_v51 = vpack.c.bf16 %v1286_v35, %v1286_v35  ;;  %1252 = vmatmul.bf16.gmra.mxu2 %v2583_v45  ;;  %v1893_v5 = vunpack.c.l.b16 %v3751_v15  ;;  %v2591_v35 = vor.u32 %v2798_v20, %v2588_v42  ;;  %v1132_v42 = vadd.f32 %v1131_v23, %v3690_v2 }
 0x284   :  { %v1350_v57 = vunpack.c.l.bf16 %v1318_v51 }
 0x285   :  { %v1213_v58 = vpop.f32.mrf.mxu2 }
 0x286   :  { %v1414_v36 = vadd.f32 %v1382_v21, %v1350_v57  ;;  %v1214_v48 = vadd.f32 %v1213_v58, %v1125_v29  ;;  %v1134_v29 = vpop.f32.mrf.mxu1  ;;  %v1384_v57 = vunpack.c.l.bf16 %v3325_v46  ;;  %v1130_v58 = vadd.f32 %v1129_v52, %v3678_v33  ;;  %v2800_v46 = vld [vmem:[%s4397_s4 + $0xc4] sm:$0xf]  ;;  %v2596_v33 = vld [vmem:[%s4397_s4 + $0xc8] sm:$0xf0] }
 0x287   :  { %v1385_v52 = vunpack.c.l.bf16 %v3352_v31 }
 0x288   :  { %v1287_v19 = vmax.f32 %v1214_v48, 0.0  ;;  %v3753_v9 = vpack.c.bf16 %v1414_v36, %v1414_v36 }
 0x28a   :  { %v1319_v61 = vpack.c.bf16 %v1287_v19, %v1287_v19  ;;  %v1894_v10 = vunpack.c.l.b16 %v3753_v9 }
 0x28c   :  { %v1351_v17 = vunpack.c.l.bf16 %v1319_v61  ;;  %v3764_v13 = vpack.c.b16 %v1894_v10, %v1893_v5 }
 0x28d   :  { %v1215_v38 = vpop.f32.mrf.mxu2 }
 0x28e   :  { %v1415_v45 = vadd.f32 %v1383_v44, %v1351_v17  ;;  %v1216_v30 = vadd.f32 %v1215_v38, %v1127_v22  ;;  %v1136_v17 = vpop.f32.mrf.mxu1 }
 0x290   :  { %v1288_v51 = vmax.f32 %v1216_v30, 0.0  ;;  %v3768_v19 = vpack.c.bf16 %v1415_v45, %v1415_v45 }
 0x292   :  { %v1320_v21 = vpack.c.bf16 %v1288_v51, %v1288_v51  ;;  %1257 = vmatmul.bf16.gmra.mxu2 %v2591_v35  ;;  %v1895_v10 = vunpack.c.l.b16 %v3768_v19  ;;  %v2599_v35 = vor.u32 %v2800_v46, %v2596_v33  ;;  %v1137_v46 = vadd.f32 %v1136_v17, %v3670_v18 }
 0x294   :  { %v1352_v36 = vunpack.c.l.bf16 %v1320_v21 }
 0x295   :  { %v1218_v48 = vpop.f32.mrf.mxu2 }
 0x296   :  { %v1416_v43 = vadd.f32 %v1384_v57, %v1352_v36  ;;  %v1219_v34 = vadd.f32 %v1218_v48, %v1130_v58  ;;  %v1386_v57 = vunpack.c.l.bf16 %v3357_v1  ;;  %v1135_v58 = vadd.f32 %v1134_v29, %v3696_v41  ;;  %v2802_v1 = vld [vmem:[%s4397_s4 + $0xd4] sm:$0xf]  ;;  %v2604_v41 = vld [vmem:[%s4397_s4 + $0xd8] sm:$0xf0] }
 0x297   :  { %v1387_v29 = vunpack.c.l.bf16 %v3428_v12 }
 0x298   :  { %v1289_v11 = vmax.f32 %v1219_v34, 0.0  ;;  %v3770_v61 = vpack.c.bf16 %v1416_v43, %v1416_v43  ;;  %v1139_v43 = vpop.f32.mrf.mxu1 }
 0x29a   :  { %v1321_v5 = vpack.c.bf16 %v1289_v11, %v1289_v11  ;;  %v1896_v20 = vunpack.c.l.b16 %v3770_v61 }
 0x29c   :  { %v1353_v44 = vunpack.c.l.bf16 %v1321_v5  ;;  %v3782_v22 = vpack.c.b16 %v1896_v20, %v1895_v10 }
 0x29d   :  { %v1220_v38 = vpop.f32.mrf.mxu2 }
 0x29e   :  { %v1417_v45 = vadd.f32 %v1385_v52, %v1353_v44  ;;  %v1221_v30 = vadd.f32 %v1220_v38, %v1132_v42 }
 0x2a0   :  { %v1290_v51 = vmax.f32 %v1221_v30, 0.0  ;;  %v3786_v31 = vpack.c.bf16 %v1417_v45, %v1417_v45  ;;  %v2607_v45 = vor.u32 %v2802_v1, %v2604_v41 }
 0x2a2   :  { %v1322_v21 = vpack.c.bf16 %v1290_v51, %v1290_v51  ;;  %1262 = vmatmul.bf16.gmra.mxu2 %v2599_v35  ;;  %v1897_v10 = vunpack.c.l.b16 %v3786_v31  ;;  %v1141_v35 = vpop.f32.mrf.mxu1 }
 0x2a4   :  { %v1354_v36 = vunpack.c.l.bf16 %v1322_v21  ;;  %v1388_v21 = vunpack.c.l.bf16 %v3425_v8  ;;  %v2804_v8 = vld [vmem:[%s4397_s4 + $0xe4] sm:$0xf] }
 0x2a5   :  { %v1223_v48 = vpop.f32.mrf.mxu2 }
 0x2a6   :  { %v1418_v2 = vadd.f32 %v1386_v57, %v1354_v36  ;;  %v1224_v23 = vadd.f32 %v1223_v48, %v1135_v58  ;;  %v1140_v57 = vadd.f32 %v1139_v43, %v3656_v0  ;;  %v2612_v0 = vld [vmem:[%s4397_s4 + $0xe8] sm:$0xf0]  ;;  %v1142_v43 = vadd.f32 %v1141_v35, %v3688_v32 }
 0x2a8   :  { %v1291_v34 = vmax.f32 %v1224_v23, 0.0  ;;  %v3788_v11 = vpack.c.bf16 %v1418_v2, %v1418_v2 }
 0x2aa   :  { %v1323_v5 = vpack.c.bf16 %v1291_v34, %v1291_v34  ;;  %v1898_v20 = vunpack.c.l.b16 %v3788_v11 }
 0x2ac   :  { %v1355_v33 = vunpack.c.l.bf16 %v1323_v5  ;;  %v3800_v52 = vpack.c.b16 %v1898_v20, %v1897_v10  ;;  %v1144_v10 = vpop.f32.mrf.mxu1 }
 0x2ad   :  { %v1225_v42 = vpop.f32.mrf.mxu2 }
 0x2ae   :  { %v1419_v44 = vadd.f32 %v1387_v29, %v1355_v33  ;;  %v1226_v38 = vadd.f32 %v1225_v42, %v1137_v46  ;;  %v2615_v46 = vor.u32 %v2804_v8, %v2612_v0  ;;  %v1389_v33 = vunpack.c.l.bf16 %v3420_v4 }
 0x2b0   :  { %v1292_v30 = vmax.f32 %v1226_v38, 0.0  ;;  %v3804_v12 = vpack.c.bf16 %v1419_v44, %v1419_v44 }
 0x2b2   :  { %v1324_v51 = vpack.c.bf16 %v1292_v30, %v1292_v30  ;;  %1267 = vmatmul.bf16.gmra.mxu2 %v2607_v45  ;;  %v1899_v34 = vunpack.c.l.b16 %v3804_v12  ;;  %v1390_v45 = vunpack.c.l.bf16 %v3417_v63  ;;  %v1145_v30 = vadd.f32 %v1144_v10, %v3674_v27  ;;  %v2806_v63 = vld [vmem:[%s4397_s4 + $0xf4] sm:$0xf]  ;;  %v2620_v27 = vld [vmem:[%s4397_s4 + $0xf8] sm:$0xf0] }
 0x2b3   :  { %v2623_v0 = vor.u32 %v2806_v63, %v2620_v27  ;;  %v1393_v63 = vunpack.c.l.bf16 %v3405_v50 }
 0x2b4   :  { %v1356_v58 = vunpack.c.l.bf16 %v1324_v51 }
 0x2b5   :  { %v1228_v36 = vpop.f32.mrf.mxu2 }
 0x2b6   :  { %v1420_v18 = vadd.f32 %v1388_v21, %v1356_v58  ;;  %v1229_v17 = vadd.f32 %v1228_v36, %v1140_v57  ;;  %v1146_v21 = vpop.f32.mrf.mxu1 }
 0x2b8   :  { %v1293_v48 = vmax.f32 %v1229_v17, 0.0  ;;  %v3806_v2 = vpack.c.bf16 %v1420_v18, %v1420_v18 }
 0x2ba   :  { %v1325_v23 = vpack.c.bf16 %v1293_v48, %v1293_v48  ;;  %v1900_v5 = vunpack.c.l.b16 %v3806_v2 }
 0x2bc   :  { %v3817_v20 = vpack.c.b16 %v1900_v5, %v1899_v34  ;;  %v1357_v41 = vunpack.c.l.bf16 %v1325_v23  ;;  %v1147_v23 = vadd.f32 %v1146_v21, %v3652_v53 }
 0x2bd   :  { %v1230_v1 = vpop.f32.mrf.mxu2 }
 0x2be   :  { %v1231_v29 = vadd.f32 %v1230_v1, %v1142_v43  ;;  %v1421_v44 = vadd.f32 %v1389_v33, %v1357_v41  ;;  %v1149_v43 = vpop.f32.mrf.mxu1  ;;  %v1391_v1 = vunpack.c.l.bf16 %v3413_v24  ;;  %v1392_v33 = vunpack.c.l.bf16 %v3408_v54 }
 0x2c0   :  { %v1294_v42 = vmax.f32 %v1231_v29, 0.0  ;;  %v3822_v32 = vpack.c.bf16 %v1421_v44, %v1421_v44 }
 0x2c2   :  { %v1326_v38 = vpack.c.bf16 %v1294_v42, %v1294_v42  ;;  %1272 = vmatmul.bf16.gmra.mxu2 %v2615_v46  ;;  %v1901_v4 = vunpack.c.l.b16 %v3822_v32  ;;  %v1150_v42 = vadd.f32 %v1149_v43, %v3640_v56 }
 0x2c4   :  { %v1358_v51 = vunpack.c.l.bf16 %v1326_v38 }
 0x2c5   :  { %v1233_v57 = vpop.f32.mrf.mxu2 }
 0x2c6   :  { %v1422_v35 = vadd.f32 %v1390_v45, %v1358_v51  ;;  %v1234_v58 = vadd.f32 %v1233_v57, %v1145_v30  ;;  %v3844_v57 = vpop.permute.xlu2 %796  ;;  %v1151_v24 = vpop.f32.mrf.mxu1 }
 0x2c7   :  { %v1152_v54 = vadd.f32 %v1151_v24, %v3644_v60 }
 0x2c8   :  { %v3824_v36 = vpack.c.bf16 %v1422_v35, %v1422_v35  ;;  %v1295_v18 = vmax.f32 %v1234_v58, 0.0 }
 0x2ca   :  { %v1327_v17 = vpack.c.bf16 %v1295_v18, %v1295_v18  ;;  %v1902_v48 = vunpack.c.l.b16 %v3824_v36 }
 0x2cc   :  { %v3835_v34 = vpack.c.b16 %v1902_v48, %v1901_v4  ;;  %v1359_v10 = vunpack.c.l.bf16 %v1327_v17 }
 0x2cd   :  { %v1235_v5 = vpop.f32.mrf.mxu2 }
 0x2ce   :  { %v1236_v8 = vadd.f32 %v1235_v5, %v1147_v23  ;;  %v1423_v29 = vadd.f32 %v1391_v1, %v1359_v10  ;;  %v782_v23 = vpop.permute.xlu0 %781 }
 0x2d0   :  { %v1296_v41 = vmax.f32 %v1236_v8, 0.0  ;;  %v3840_v53 = vpack.c.bf16 %v1423_v29, %v1423_v29  ;;  %v772_v8 = vpop.permute.xlu2 %771 }
 0x2d1   :  { %v1155_v43 = vadd.f32 %v3642_v7, %v772_v8 }
 0x2d2   :  { %v1328_v46 = vpack.c.bf16 %v1296_v41, %v1296_v41  ;;  %1277 = vmatmul.bf16.gmra.mxu2 %v2623_v0  ;;  %v1903_v58 = vunpack.c.l.b16 %v3840_v53  ;;  %v1394_v0 = vunpack.c.l.bf16 %v3410_v55  ;;  %v1395_v55 = vunpack.c.l.bf16 %v3433_v39 }
 0x2d4   :  { %v1360_v44 = vunpack.c.l.bf16 %v1328_v46 }
 0x2d5   :  { %v1238_v38 = vpop.f32.mrf.mxu2 }
 0x2d6   :  { %v1424_v45 = vadd.f32 %v1392_v33, %v1360_v44  ;;  %v1239_v30 = vadd.f32 %v1238_v38, %v1150_v42  ;;  %v3854_v33 = vpop.permute.xlu1 %806 }
 0x2d8   :  { %v3842_v51 = vpack.c.bf16 %v1424_v45, %v1424_v45  ;;  %v1297_v21 = vmax.f32 %v1239_v30, 0.0  ;;  %v777_v30 = vpop.permute.xlu0 %776 }
 0x2d9   :  { %v1157_v7 = vadd.f32 %v3654_v40, %v777_v30 }
 0x2da   :  { %v1329_v35 = vpack.c.bf16 %v1297_v21, %v1297_v21  ;;  %v1904_v18 = vunpack.c.l.b16 %v3842_v51 }
 0x2dc   :  { %v1929_v56 = vpack.c.b16 %v1904_v18, %v1903_v58  ;;  %v1361_v4 = vunpack.c.l.bf16 %v1329_v35 }
 0x2dd   :  { %v1240_v17 = vpop.f32.mrf.mxu2 }
 0x2de   :  { %v1241_v48 = vadd.f32 %v1240_v17, %v1152_v54  ;;  %v1425_v5 = vadd.f32 %v1393_v63, %v1361_v4  ;;  %v792_v17 = vpop.permute.xlu1 %791  ;;  %v1160_v63 = vadd.f32 %v3660_v6, %v782_v23  ;;  %v1397_v6 = vunpack.c.l.bf16 %v3458_v62 }
 0x2e0   :  { %v1298_v27 = vmax.f32 %v1241_v48, 0.0  ;;  %v3852_v29 = vpack.c.bf16 %v1425_v5, %v1425_v5  ;;  %v1396_v48 = vunpack.c.l.bf16 %v3435_v47 }
 0x2e2   :  { %v1330_v10 = vpack.c.bf16 %v1298_v27, %v1298_v27  ;;  %v1905_v38 = vunpack.c.l.b16 %v3852_v29 }
 0x2e4   :  { %v1362_v1 = vunpack.c.l.bf16 %v1330_v10 }
 0x2e5   :  { %v1243_v41 = vpop.f32.mrf.mxu2 }
 0x2e6   :  { %v1426_v60 = vadd.f32 %v1394_v0, %v1362_v1  ;;  %v1244_v46 = vadd.f32 %v1243_v41, %v1155_v43  ;;  %v787_v1 = vpop.permute.xlu1 %786 }
 0x2e7   :  { %v1162_v23 = vadd.f32 %v3672_v25, %v787_v1  ;;  %v2634_v1 = vld [vmem:[%s4398_s6 + $0x10] sm:$0xf] }
 0x2e8   :  { %v3856_v42 = vpack.c.bf16 %v1426_v60, %v1426_v60  ;;  %v1299_v50 = vmax.f32 %v1244_v46, 0.0 }
 0x2ea   :  { %v1331_v44 = vpack.c.bf16 %v1299_v50, %v1299_v50  ;;  %v1906_v45 = vunpack.c.l.b16 %v3856_v42 }
 0x2ec   :  { %v1363_v21 = vunpack.c.l.bf16 %v1331_v44  ;;  %v1930_v24 = vpack.c.b16 %v1906_v45, %v1905_v38  ;;  %v1165_v45 = vadd.f32 %v3686_v26, %v792_v17 }
 0x2ed   :  { %v1245_v35 = vpop.f32.mrf.mxu2 }
 0x2ee   :  { %v1427_v58 = vadd.f32 %v1395_v55, %v1363_v21  ;;  %v1246_v18 = vadd.f32 %v1245_v35, %v1157_v7  ;;  %1955 = vmatpush.bf16.msrb.mxu3 %v1930_v24 }
 0x2f0   :  { %v1300_v54 = vmax.f32 %v1246_v18, 0.0  ;;  %v3864_v10 = vpack.c.bf16 %v1427_v58, %v1427_v58  ;;  %v1167_v18 = vadd.f32 %v3694_v16, %v3844_v57 }
 0x2f2   :  { %v1332_v4 = vpack.c.bf16 %v1300_v54, %v1300_v54  ;;  %1956 = vmatpush.bf16.msrb.mxu3 %v1929_v56  ;;  %v1907_v56 = vunpack.c.l.b16 %v3864_v10 }
 0x2f4   :  { %v1364_v27 = vunpack.c.l.bf16 %v1332_v4 }
 0x2f5   :  { %v1248_v5 = vpop.f32.mrf.mxu2 }
 0x2f6   :  { %v1428_v39 = vadd.f32 %v1396_v48, %v1364_v27  ;;  %v1249_v40 = vadd.f32 %v1248_v5, %v1160_v63  ;;  %1957 = vmatpush.bf16.msrb.mxu3 %v3835_v34 }
 0x2f8   :  { %v3867_v8 = vpack.c.bf16 %v1428_v39, %v1428_v39  ;;  %v1301_v0 = vmax.f32 %v1249_v40, 0.0  ;;  %v1174_v39 = vpop.f32.mrf.mxu3  ;;  %v4444_v40 = vld [vmem:[#allocation23_spill] sm:$0xff] }
 0x2fa   :  { %v1333_v43 = vpack.c.bf16 %v1301_v0, %v1301_v0  ;;  %1958 = vmatpush.bf16.msrb.mxu3 %v3817_v20  ;;  %v1908_v47 = vunpack.c.l.b16 %v3867_v8  ;;  %v1398_v20 = vunpack.c.l.bf16 %v3479_v37  ;;  %v4445_v0 = vld [vmem:[#allocation18_spill] sm:$0xff] }
 0x2fc   :  { %v1365_v41 = vunpack.c.l.bf16 %v1333_v43  ;;  %v3874_v60 = vpack.c.b16 %v1908_v47, %v1907_v56  ;;  %v1170_v43 = vadd.f32 %v4445_v0, %v4444_v40 }
 0x2fd   :  { %v1250_v46 = vpop.f32.mrf.mxu2 }
 0x2fe   :  { %v1429_v34 = vadd.f32 %v1397_v6, %v1365_v41  ;;  %v1251_v50 = vadd.f32 %v1250_v46, %v1162_v23  ;;  %1959 = vmatpush.bf16.msrb.mxu3 %v3800_v52  ;;  %v2626_v52 = vld [vmem:[%s4398_s6] sm:$0xf]  ;;  %v2811_v6 = vld [vmem:[%s4398_s6 + $0x14] sm:$0xf0] }
 0x2ff   :  { %v2635_v41 = vor.u32 %v2811_v6, %v2634_v1 }
 0x300   :  { %v1302_v44 = vmax.f32 %v1251_v50, 0.0  ;;  %v3880_v55 = vpack.c.bf16 %v1429_v34, %v1429_v34 }
 0x302   :  { %v1334_v38 = vpack.c.bf16 %v1302_v44, %v1302_v44  ;;  %1960 = vmatpush.bf16.msrb.mxu3 %v3782_v22  ;;  %v2809_v22 = vld [vmem:[%s4398_s6 + $0x4] sm:$0xf0]  ;;  %v1909_v35 = vunpack.c.l.b16 %v3880_v55 }
 0x303   :  { %v2627_v26 = vor.u32 %v2809_v22, %v2626_v52  ;;  %v4446_v44 = vld [vmem:[#allocation3_spill] sm:$0xff] }
 0x304   :  { %v1366_v30 = vunpack.c.l.bf16 %v1334_v38  ;;  %v1401_v38 = vunpack.c.l.bf16 %v4446_v44 }
 0x305   :  { %v1253_v62 = vpop.f32.mrf.mxu2 }
 0x306   :  { %v1430_v25 = vadd.f32 %v1398_v20, %v1366_v30  ;;  %v1254_v7 = vadd.f32 %v1253_v62, %v1165_v45  ;;  %1961 = vmatpush.bf16.msrb.mxu3 %v3764_v13  ;;  %v1399_v13 = vunpack.c.l.bf16 %v3499_v49  ;;  %v4447_v20 = vld [vmem:[#allocation21_spill] sm:$0xff] }
 0x307   :  { %v1172_v45 = vadd.f32 %v4447_v20, %v3854_v33  ;;  %v4454_v20 = vld [vmem:[#allocation11_spill] sm:$0xff] }
 0x308   :  { %v3889_v21 = vpack.c.bf16 %v1430_v25, %v1430_v25  ;;  %v1303_v37 = vmax.f32 %v1254_v7, 0.0  ;;  %v1176_v25 = vpop.f32.mrf.mxu3 }
 0x30a   :  { %v1335_v24 = vpack.c.bf16 %v1303_v37, %v1303_v37  ;;  %1962 = vmatpush.bf16.msrb.mxu3 %v3747_v14  ;;  %v1910_v58 = vunpack.c.l.b16 %v3889_v21  ;;  %v1400_v14 = vunpack.c.l.bf16 %v3516_v59 }
 0x30c   :  { %v1367_v54 = vunpack.c.l.bf16 %v1335_v24  ;;  %v3897_v17 = vpack.c.b16 %v1910_v58, %v1909_v35  ;;  %v4448_v24 = vld [vmem:[#allocation4_spill] sm:$0xff]  ;;  %v4449_v58 = vld [vmem:[#allocation17_spill] sm:$0xff] }
 0x30d   :  { %v1255_v4 = vpop.f32.mrf.mxu2  ;;  %1963 = vmatmul.bf16.vlgmr.msrb.gmra.mxu3 %v2627_v26  ;;  %v1402_v35 = vunpack.c.l.bf16 %v4448_v24  ;;  %v2650_v24 = vld [vmem:[%s4398_s6 + $0x30] sm:$0xf] }
 0x30e   :  { %v1431_v48 = vadd.f32 %v1399_v13, %v1367_v54  ;;  %v1256_v63 = vadd.f32 %v1255_v4, %v1167_v18  ;;  %v1175_v13 = vadd.f32 %v1174_v39, %v4449_v58 }
 0x310   :  { %v1304_v27 = vmax.f32 %v1256_v63, 0.0  ;;  %v3902_v47 = vpack.c.bf16 %v1431_v48, %v1431_v48  ;;  %v2642_v63 = vld [vmem:[%s4398_s6 + $0x20] sm:$0xf] }
 0x312   :  { %v1336_v5 = vpack.c.bf16 %v1304_v27, %v1304_v27  ;;  %v1911_v34 = vunpack.c.l.b16 %v3902_v47  ;;  %v2813_v27 = vld [vmem:[%s4398_s6 + $0x24] sm:$0xf0] }
 0x313   :  { %v2643_v0 = vor.u32 %v2813_v27, %v2642_v63  ;;  %v4458_v27 = vld [vmem:[#allocation16_spill] sm:$0xff] }
 0x314   :  { %v1368_v56 = vunpack.c.l.bf16 %v1336_v5  ;;  %v1179_v5 = vpop.f32.mrf.mxu3 }
 0x315   :  { %v1258_v49 = vpop.f32.mrf.mxu2 }
 0x316   :  { %v1432_v16 = vadd.f32 %v1400_v14, %v1368_v56  ;;  %v1259_v57 = vadd.f32 %v1258_v49, %v1170_v43  ;;  %v4452_v49 = vld [vmem:[#allocation12_spill] sm:$0xff] }
 0x318   :  { %v3910_v23 = vpack.c.bf16 %v1432_v16, %v1432_v16  ;;  %v1305_v59 = vmax.f32 %v1259_v57, 0.0  ;;  %v1403_v16 = vunpack.c.l.bf16 %v4452_v49  ;;  %v4453_v57 = vld [vmem:[#allocation20_spill] sm:$0xff] }
 0x319   :  { %v1177_v1 = vadd.f32 %v1176_v25, %v4453_v57 }
 0x31a   :  { %v1337_v46 = vpack.c.bf16 %v1305_v59, %v1305_v59  ;;  %v1912_v50 = vunpack.c.l.b16 %v3910_v23 }
 0x31c   :  { %v1369_v30 = vunpack.c.l.bf16 %v1337_v46  ;;  %v3917_v62 = vpack.c.b16 %v1912_v50, %v1911_v34  ;;  %v1181_v44 = vpop.f32.mrf.mxu3 }
 0x31d   :  { %v1260_v7 = vpop.f32.mrf.mxu2  ;;  %1968 = vmatmul.bf16.gmra.mxu3 %v2635_v41 }
 0x31e   :  { %v1433_v52 = vadd.f32 %v1401_v38, %v1369_v30  ;;  %v1261_v22 = vadd.f32 %v1260_v7, %v1172_v45  ;;  %v1404_v45 = vunpack.c.l.bf16 %v4454_v20  ;;  %v4455_v30 = vld [vmem:[#allocation22_spill] sm:$0xff] }
 0x31f   :  { %v1180_v7 = vadd.f32 %v1179_v5, %v4455_v30  ;;  %v1182_v5 = vadd.f32 %v1181_v44, %v4458_v27 }
 0x320   :  { %v1306_v37 = vmax.f32 %v1261_v22, 0.0  ;;  %v3921_v4 = vpack.c.bf16 %v1433_v52, %v1433_v52 }
 0x322   :  { %v1338_v26 = vpack.c.bf16 %v1306_v37, %v1306_v37  ;;  %4450 = vst [vmem:[#allocation23_spill] sm:$0xff] %v3921_v4  ;;  %v1913_v43 = vunpack.c.l.b16 %v3921_v4 }
 0x324   :  { %v1370_v18 = vunpack.c.l.bf16 %v1338_v26  ;;  %v1184_v63 = vpop.f32.mrf.mxu3 }
 0x325   :  { %v1263_v54 = vpop.f32.mrf.mxu2 }
 0x326   :  { %v1434_v48 = vadd.f32 %v1402_v35, %v1370_v18  ;;  %v1264_v33 = vadd.f32 %v1263_v54, %v1175_v13  ;;  %v2815_v35 = vld [vmem:[%s4398_s6 + $0x34] sm:$0xf0] }
 0x327   :  { %v2651_v18 = vor.u32 %v2815_v35, %v2650_v24 }
 0x328   :  { %v3929_v14 = vpack.c.bf16 %v1434_v48, %v1434_v48  ;;  %v1307_v40 = vmax.f32 %v1264_v33, 0.0 }
 0x32a   :  { %4451 = vst [vmem:[#allocation18_spill] sm:$0xff] %v3929_v14  ;;  %v1339_v39 = vpack.c.bf16 %v1307_v40, %v1307_v40  ;;  %v1914_v56 = vunpack.c.l.b16 %v3929_v14 }
 0x32c   :  { %v1371_v6 = vunpack.c.l.bf16 %v1339_v39  ;;  %v3935_v59 = vpack.c.b16 %v1914_v56, %v1913_v43  ;;  %v4459_v56 = vld [vmem:[#allocation10_spill] sm:$0xff] }
 0x32d   :  { %v1265_v41 = vpop.f32.mrf.mxu2  ;;  %1973 = vmatmul.bf16.gmra.mxu3 %v2643_v0  ;;  %v1405_v49 = vunpack.c.l.bf16 %v4459_v56 }
 0x32e   :  { %v1435_v46 = vadd.f32 %v1403_v16, %v1371_v6  ;;  %v1266_v34 = vadd.f32 %v1265_v41, %v1177_v1  ;;  %v4460_v6 = vld [vmem:[#allocation9_spill] sm:$0xff] }
 0x32f   :  { %v1406_v41 = vunpack.c.l.bf16 %v4460_v6 }
 0x330   :  { %v1308_v50 = vmax.f32 %v1266_v34, 0.0  ;;  %v3939_v37 = vpack.c.bf16 %v1435_v46, %v1435_v46  ;;  %v4461_v46 = vld [vmem:[#allocation15_spill] sm:$0xff] }
 0x331   :  { %v1185_v34 = vadd.f32 %v1184_v63, %v4461_v46 }
 0x332   :  { %v1340_v38 = vpack.c.bf16 %v1308_v50, %v1308_v50  ;;  %4456 = vst [vmem:[#allocation3_spill] sm:$0xff] %v3939_v37  ;;  %v1915_v48 = vunpack.c.l.b16 %v3939_v37 }
 0x334   :  { %v1372_v52 = vunpack.c.l.bf16 %v1340_v38  ;;  %v1186_v38 = vpop.f32.mrf.mxu3 }
 0x335   :  { %v1268_v22 = vpop.f32.mrf.mxu2 }
 0x336   :  { %v1436_v26 = vadd.f32 %v1404_v45, %v1372_v52  ;;  %v1269_v25 = vadd.f32 %v1268_v22, %v1180_v7  ;;  %v2658_v7 = vld [vmem:[%s4398_s6 + $0x40] sm:$0xf]  ;;  %v2817_v52 = vld [vmem:[%s4398_s6 + $0x44] sm:$0xf0] }
 0x338   :  { %v3947_v58 = vpack.c.bf16 %v1436_v26, %v1436_v26  ;;  %v1309_v13 = vmax.f32 %v1269_v25, 0.0  ;;  %v2659_v25 = vor.u32 %v2817_v52, %v2658_v7 }
 0x33a   :  { %4457 = vst [vmem:[#allocation21_spill] sm:$0xff] %v3947_v58  ;;  %v1341_v54 = vpack.c.bf16 %v1309_v13, %v1309_v13  ;;  %v1916_v33 = vunpack.c.l.b16 %v3947_v58 }
 0x33c   :  { %v3952_v40 = vpack.c.b16 %v1916_v33, %v1915_v48  ;;  %v1373_v39 = vunpack.c.l.bf16 %v1341_v54 }
 0x33d   :  { %v1270_v0 = vpop.f32.mrf.mxu2  ;;  %1978 = vmatmul.bf16.gmra.mxu3 %v2651_v18  ;;  %v4464_v18 = vld [vmem:[#allocation19_spill] sm:$0xff] }
 0x33e   :  { %v1271_v43 = vadd.f32 %v1270_v0, %v1182_v5  ;;  %v1437_v57 = vadd.f32 %v1405_v49, %v1373_v39  ;;  %v1187_v54 = vadd.f32 %v1186_v38, %v4464_v18  ;;  %v1189_v5 = vpop.f32.mrf.mxu3  ;;  %v4465_v0 = vld [vmem:[#allocation8_spill] sm:$0xff] }
 0x33f   :  { %v1407_v39 = vunpack.c.l.bf16 %v4465_v0 }
 0x340   :  { %v1310_v16 = vmax.f32 %v1271_v43, 0.0  ;;  %v3957_v45 = vpack.c.bf16 %v1437_v57, %v1437_v57 }
 0x342   :  { %v1342_v1 = vpack.c.bf16 %v1310_v16, %v1310_v16  ;;  %4462 = vst [vmem:[#allocation4_spill] sm:$0xff] %v3957_v45  ;;  %v1917_v35 = vunpack.c.l.b16 %v3957_v45  ;;  %v4466_v16 = vld [vmem:[#allocation6_spill] sm:$0xff] }
 0x343   :  { %v1408_v57 = vunpack.c.l.bf16 %v4466_v16 }
 0x344   :  { %v1374_v50 = vunpack.c.l.bf16 %v1342_v1  ;;  %v4467_v1 = vld [vmem:[#allocation13_spill] sm:$0xff] }
 0x345   :  { %v1273_v20 = vpop.f32.mrf.mxu2  ;;  %v1190_v6 = vadd.f32 %v1189_v5, %v4467_v1  ;;  %v4471_v5 = vld [vmem:[#allocation5_spill] sm:$0xff] }
 0x346   :  { %v1438_v44 = vadd.f32 %v1406_v41, %v1374_v50  ;;  %v1274_v30 = vadd.f32 %v1273_v20, %v1185_v34  ;;  %v2666_v20 = vld [vmem:[%s4398_s6 + $0x50] sm:$0xf]  ;;  %v1191_v52 = vpop.f32.mrf.mxu3  ;;  %v1409_v0 = vunpack.c.l.bf16 %v4471_v5  ;;  %v2812_v5 = vld [vmem:[%s4398_s6 + $0x24] sm:$0xf] }
 0x348   :  { %v3965_v22 = vpack.c.bf16 %v1438_v44, %v1438_v44  ;;  %v1311_v26 = vmax.f32 %v1274_v30, 0.0  ;;  %v2819_v44 = vld [vmem:[%s4398_s6 + $0x54] sm:$0xf0] }
 0x34a   :  { %4463 = vst [vmem:[#allocation17_spill] sm:$0xff] %v3965_v22  ;;  %v1343_v24 = vpack.c.bf16 %v1311_v26, %v1311_v26  ;;  %v1918_v13 = vunpack.c.l.b16 %v3965_v22  ;;  %v2667_v26 = vor.u32 %v2819_v44, %v2666_v20  ;;  %v2824_v22 = vld [vmem:[%s4398_s6 + $0x84] sm:$0xf] }
 0x34c   :  { %v1936_v48 = vpack.c.b16 %v1918_v13, %v1917_v35  ;;  %v1375_v63 = vunpack.c.l.bf16 %v1343_v24  ;;  %v4470_v13 = vld [vmem:[#allocation14_spill] sm:$0xff] }
 0x34d   :  { %v1275_v33 = vpop.f32.mrf.mxu2  ;;  %1983 = vmatmul.bf16.gmra.mxu3 %v2659_v25  ;;  %v1192_v18 = vadd.f32 %v1191_v52, %v4470_v13  ;;  %v2682_v52 = vld [vmem:[%s4398_s6 + $0x70] sm:$0xf]  ;;  %v2827_v13 = vld [vmem:[%s4398_s6 + $0x94] sm:$0xf0] }
 0x34e   :  { %v1276_v27 = vadd.f32 %v1275_v33, %v1187_v54  ;;  %v1439_v56 = vadd.f32 %v1407_v39, %v1375_v63 }
 0x350   :  { %v1312_v43 = vmax.f32 %v1276_v27, 0.0  ;;  %v3973_v34 = vpack.c.bf16 %v1439_v56, %v1439_v56 }
 0x352   :  { %v1344_v49 = vpack.c.bf16 %v1312_v43, %v1312_v43  ;;  %4468 = vst [vmem:[#allocation12_spill] sm:$0xff] %v3973_v34  ;;  %v1919_v24 = vunpack.c.l.b16 %v3973_v34 }
 0x354   :  { %v1376_v41 = vunpack.c.l.bf16 %v1344_v49  ;;  %v4472_v49 = vld [vmem:[#allocation7_spill] sm:$0xff] }
 0x355   :  { %v1278_v46 = vpop.f32.mrf.mxu2  ;;  %v1410_v16 = vunpack.c.l.bf16 %v4472_v49  ;;  %v2714_v49 = vld [vmem:[%s4398_s6 + $0xb0] sm:$0xf] }
 0x356   :  { %v1440_v50 = vadd.f32 %v1408_v57, %v1376_v41  ;;  %v1279_v38 = vadd.f32 %v1278_v46, %v1190_v6  ;;  %v2674_v41 = vld [vmem:[%s4398_s6 + $0x60] sm:$0xf]  ;;  %v2821_v46 = vld [vmem:[%s4398_s6 + $0x64] sm:$0xf0] }
 0x358   :  { %v3981_v30 = vpack.c.bf16 %v1440_v50, %v1440_v50  ;;  %v1313_v7 = vmax.f32 %v1279_v38, 0.0  ;;  %v2675_v38 = vor.u32 %v2821_v46, %v2674_v41  ;;  %v2652_v41 = vld [vmem:[%s4398_s6 + $0x38] sm:$0xf0] }
 0x35a   :  { %4469 = vst [vmem:[#allocation20_spill] sm:$0xff] %v3981_v30  ;;  %v1345_v25 = vpack.c.bf16 %v1313_v7, %v1313_v7  ;;  %v1920_v35 = vunpack.c.l.b16 %v3981_v30 }
 0x35c   :  { %v1937_v54 = vpack.c.b16 %v1920_v35, %v1919_v24  ;;  %v1377_v63 = vunpack.c.l.bf16 %v1345_v25  ;;  %v2825_v24 = vld [vmem:[%s4398_s6 + $0x84] sm:$0xf0]  ;;  %v2808_v35 = vld [vmem:[%s4398_s6 + $0x4] sm:$0xf] }
 0x35d   :  { %v1280_v33 = vpop.f32.mrf.mxu2  ;;  %1988 = vmatmul.bf16.gmra.mxu3 %v2667_v26  ;;  %v2823_v26 = vld [vmem:[%s4398_s6 + $0x74] sm:$0xf0] }
 0x35e   :  { %v1281_v27 = vadd.f32 %v1280_v33, %v1192_v18  ;;  %v1441_v43 = vadd.f32 %v1409_v0, %v1377_v63  ;;  %v2683_v25 = vor.u32 %v2823_v26, %v2682_v52  ;;  %v2810_v18 = vld [vmem:[%s4398_s6 + $0x14] sm:$0xf]  ;;  %v2706_v63 = vld [vmem:[%s4398_s6 + $0xa0] sm:$0xf]  ;;  %v2644_v0 = vld [vmem:[%s4398_s6 + $0x28] sm:$0xf0] }
 0x360   :  { %v1314_v39 = vmax.f32 %v1281_v27, 0.0  ;;  %v3988_v1 = vpack.c.bf16 %v1441_v43, %v1441_v43  ;;  %v2829_v27 = vld [vmem:[%s4398_s6 + $0xa4] sm:$0xf0]  ;;  %v2647_v43 = vor.u32 %v2812_v5, %v2644_v0  ;;  %v2835_v5 = vld [vmem:[%s4398_s6 + $0xd4] sm:$0xf0] }
 0x361   :  { %v2818_v0 = vld [vmem:[%s4398_s6 + $0x54] sm:$0xf] }
 0x362   :  { %v1346_v56 = vpack.c.bf16 %v1314_v39, %v1314_v39  ;;  %4473 = vst [vmem:[#allocation11_spill] sm:$0xff] %v3988_v1  ;;  %v1921_v20 = vunpack.c.l.b16 %v3988_v1  ;;  %v2707_v39 = vor.u32 %v2829_v27, %v2706_v63  ;;  %v2730_v63 = vld [vmem:[%s4398_s6 + $0xd0] sm:$0xf] }
 0x363   :  { %v2746_v1 = vld [vmem:[%s4398_s6 + $0xf0] sm:$0xf] }
 0x364   :  { %v1378_v57 = vunpack.c.l.bf16 %v1346_v56  ;;  %v4047_v56 = vpop.permute.xlu2 %1616 }
 0x366   :  { %v1442_v6 = vadd.f32 %v1410_v16, %v1378_v57  ;;  %v4052_v16 = vpop.permute.xlu0 %1691  ;;  %v2831_v57 = vld [vmem:[%s4398_s6 + $0xb4] sm:$0xf0] }
 0x367   :  { %4475 = vst [vmem:[#allocation16_spill] sm:$0xff] %v4052_v16 }
 0x368   :  { %v3996_v50 = vpack.c.bf16 %v1442_v6, %v1442_v6  ;;  %v2814_v6 = vld [vmem:[%s4398_s6 + $0x34] sm:$0xf] }
 0x36a   :  { %4474 = vst [vmem:[#allocation22_spill] sm:$0xff] %v3996_v50  ;;  %v1922_v44 = vunpack.c.l.b16 %v3996_v50 }
 0x36c   :  { %v1938_v7 = vpack.c.b16 %v1922_v44, %v1921_v20  ;;  %v2715_v20 = vor.u32 %v2831_v57, %v2714_v49  ;;  %v2655_v44 = vor.u32 %v2814_v6, %v2652_v41 }
 0x36d   :  { %1993 = vmatmul.bf16.gmra.mxu3 %v2675_v38  ;;  %v4065_v38 = vpop.permute.xlu2 %1601 }
 0x36e   :  { %2044 = vmatpush.bf16.msrb.mxu1 %v1938_v7  ;;  %v4067_v7 = vpop.permute.xlu0 %1606 }
 0x372   :  { %2045 = vmatpush.bf16.msrb.mxu1 %v1937_v54  ;;  %v2636_v54 = vld [vmem:[%s4398_s6 + $0x18] sm:$0xf0] }
 0x375   :  { %v4071_v26 = vpop.permute.xlu2 %1686 }
 0x376   :  { %2046 = vmatpush.bf16.msrb.mxu1 %v1936_v48  ;;  %v2690_v48 = vld [vmem:[%s4398_s6 + $0x80] sm:$0xf]  ;;  %4476 = vst [vmem:[#allocation10_spill] sm:$0xff] %v4071_v26 }
 0x37a   :  { %2047 = vmatpush.bf16.msrb.mxu1 %v3952_v40  ;;  %v2691_v40 = vor.u32 %v2825_v24, %v2690_v48  ;;  %v2833_v48 = vld [vmem:[%s4398_s6 + $0xc4] sm:$0xf0]  ;;  %v2816_v24 = vld [vmem:[%s4398_s6 + $0x44] sm:$0xf] }
 0x37d   :  { %1998 = vmatmul.bf16.gmra.mxu3 %v2683_v25  ;;  %v2722_v25 = vld [vmem:[%s4398_s6 + $0xc0] sm:$0xf] }
 0x37e   :  { %2048 = vmatpush.bf16.msrb.mxu1 %v3935_v59  ;;  %v2628_v59 = vld [vmem:[%s4398_s6 + $0x8] sm:$0xf0] }
 0x382   :  { %2049 = vmatpush.bf16.msrb.mxu1 %v3917_v62  ;;  %v2631_v62 = vor.u32 %v2808_v35, %v2628_v59  ;;  %v2660_v35 = vld [vmem:[%s4398_s6 + $0x48] sm:$0xf0]  ;;  %v4085_v59 = vpop.permute.xlu1 %1611 }
 0x386   :  { %2050 = vmatpush.bf16.msrb.mxu1 %v3897_v17  ;;  %v2698_v17 = vld [vmem:[%s4398_s6 + $0x90] sm:$0xf] }
 0x387   :  { %v2699_v33 = vor.u32 %v2827_v13, %v2698_v17  ;;  %v4087_v17 = vpop.permute.xlu0 %1591 }
 0x38a   :  { %2051 = vmatpush.bf16.msrb.mxu1 %v3874_v60  ;;  %v2639_v60 = vor.u32 %v2810_v18, %v2636_v54  ;;  %v4091_v18 = vpop.permute.xlu2 %1671  ;;  %v4093_v54 = vpop.permute.xlu1 %1696 }
 0x38b   :  { %4477 = vst [vmem:[#allocation9_spill] sm:$0xff] %v4091_v18 }
 0x38c   :  { %4478 = vst [vmem:[#allocation15_spill] sm:$0xff] %v4093_v54 }
 0x38d   :  { %2003 = vmatmul.bf16.gmra.mxu3 %v2691_v40  ;;  %2052 = vmatmul.bf16.vlgmr.msrb.gmra.mxu1 %v2631_v62  ;;  %v2723_v40 = vor.u32 %v2833_v48, %v2722_v25  ;;  %v2663_v62 = vor.u32 %v2816_v24, %v2660_v35  ;;  %v2837_v48 = vld [vmem:[%s4398_s6 + $0xe4] sm:$0xf0]  ;;  %v2820_v24 = vld [vmem:[%s4398_s6 + $0x64] sm:$0xf]  ;;  %v2676_v35 = vld [vmem:[%s4398_s6 + $0x68] sm:$0xf0] }
 0x390   :  { %v4063_v46 = vpop.f32.mrf.mxu3 }
 0x392   :  { %v4102_v27 = vpop.permute.xlu2 %1586  ;;  %v4113_v57 = vpop.permute.xlu1 %1681 }
 0x393   :  { %4480 = vst [vmem:[#allocation8_spill] sm:$0xff] %v4113_v57 }
 0x398   :  { %v4069_v52 = vpop.f32.mrf.mxu3 }
 0x39a   :  { %v4124_v25 = vpop.permute.xlu1 %1596 }
 0x39d   :  { %2008 = vmatmul.bf16.gmra.mxu3 %v2699_v33  ;;  %2057 = vmatmul.bf16.gmra.mxu1 %v2639_v60  ;;  %v4095_v33 = vpop.permute.xlu0 %1676 }
 0x39e   :  { %4479 = vst [vmem:[#allocation19_spill] sm:$0xff] %v4095_v33 }
 0x3a0   :  { %v4089_v13 = vpop.f32.mrf.mxu3 }
 0x3a5   :  { %v4115_v6 = vpop.permute.xlu0 %1661 }
 0x3a6   :  { %4481 = vst [vmem:[#allocation6_spill] sm:$0xff] %v4115_v6 }
 0x3a8   :  { %v4097_v60 = vpop.f32.mrf.mxu3 }
 0x3ad   :  { %2013 = vmatmul.bf16.gmra.mxu3 %v2707_v39  ;;  %2062 = vmatmul.bf16.gmra.mxu1 %v2647_v43  ;;  %v2668_v39 = vld [vmem:[%s4398_s6 + $0x58] sm:$0xf0]  ;;  %v2731_v43 = vor.u32 %v2835_v5, %v2730_v63  ;;  %v2679_v5 = vor.u32 %v2820_v24, %v2676_v35 }
 0x3ae   :  { %v2671_v49 = vor.u32 %v2818_v0, %v2668_v39  ;;  %v4141_v39 = vpop.permute.xlu1 %1581  ;;  %v2684_v24 = vld [vmem:[%s4398_s6 + $0x78] sm:$0xf0] }
 0x3b0   :  { %v4117_v41 = vpop.f32.mrf.mxu3 }
 0x3bd   :  { %2018 = vmatmul.bf16.gmra.mxu3 %v2715_v20  ;;  %2067 = vmatmul.bf16.gmra.mxu1 %v2655_v44  ;;  %v4119_v20 = vpop.permute.xlu2 %1571  ;;  %v2738_v44 = vld [vmem:[%s4398_s6 + $0xe0] sm:$0xf] }
 0x3be   :  { %v2739_v63 = vor.u32 %v2837_v48, %v2738_v44  ;;  %v2839_v44 = vld [vmem:[%s4398_s6 + $0xf4] sm:$0xf0]  ;;  %v2822_v48 = vld [vmem:[%s4398_s6 + $0x74] sm:$0xf] }
 0x3bf   :  { %v2747_v35 = vor.u32 %v2839_v44, %v2746_v1  ;;  %v2692_v1 = vld [vmem:[%s4398_s6 + $0x88] sm:$0xf0] }
 0x3c5   :  { %v4139_v0 = vpop.permute.xlu2 %1656 }
 0x3c6   :  { %4482 = vst [vmem:[#allocation13_spill] sm:$0xff] %v4139_v0 }
 0x3cd   :  { %2023 = vmatmul.bf16.gmra.mxu3 %v2723_v40  ;;  %2072 = vmatmul.bf16.gmra.mxu1 %v2663_v62  ;;  %v4135_v40 = vpop.permute.xlu0 %1576  ;;  %v4137_v62 = vpop.f32.mrf.mxu3 }
 0x3ce   :  { %v4147_v50 = vpop.permute.xlu2 %1641 }
 0x3d6   :  { %v1557_v34 = vpop.permute.xlu2 %1556 }
 0x3dd   :  { %2028 = vmatmul.bf16.gmra.mxu3 %v2731_v43  ;;  %2077 = vmatmul.bf16.gmra.mxu1 %v2671_v49  ;;  %v4143_v43 = vpop.permute.xlu0 %1561  ;;  %v4145_v49 = vpop.f32.mrf.mxu3 }
 0x3de   :  { %v1542_v44 = vpop.permute.xlu2 %1541 }
 0x3e5   :  { %v4163_v54 = vpop.permute.xlu0 %1646  ;;  %v4165_v30 = vpop.f32.mrf.mxu3 }
 0x3ed   :  { %2033 = vmatmul.bf16.gmra.mxu3 %v2739_v63  ;;  %2082 = vmatmul.bf16.gmra.mxu1 %v2679_v5  ;;  %v2687_v63 = vor.u32 %v2822_v48, %v2684_v24  ;;  %v4161_v5 = vpop.permute.xlu1 %1666  ;;  %v4169_v26 = vpop.permute.xlu0 %1631  ;;  %v1965_v48 = vadd.f32 %v4063_v46, %v1542_v44  ;;  %v2695_v24 = vor.u32 %v2824_v22, %v2692_v1  ;;  %v2826_v22 = vld [vmem:[%s4398_s6 + $0x94] sm:$0xf] }
 0x3ee   :  { %4483 = vst [vmem:[#allocation14_spill] sm:$0xff] %v4161_v5  ;;  %v2229_v5 = vunpack.c.l.bf16 %v3734_v28  ;;  %v4188_v44 = vpop.f32.mrf.mxu3 }
 0x3f5   :  { %v4167_v16 = vpop.permute.xlu1 %1651  ;;  %v1547_v58 = vpop.permute.xlu0 %1546 }
 0x3f6   :  { %v1967_v18 = vadd.f32 %v4069_v52, %v1547_v58 }
 0x3fd   :  { %2038 = vmatmul.bf16.gmra.mxu3 %v2747_v35  ;;  %2087 = vmatmul.bf16.gmra.mxu1 %v2687_v63  ;;  %v1567_v57 = vpop.permute.xlu1 %1566 }
 0x405   :  { %v1552_v1 = vpop.permute.xlu1 %1551 }
 0x406   :  { %v1970_v58 = vadd.f32 %v4089_v13, %v1552_v1  ;;  %v4198_v13 = vpop.f32.mrf.mxu3  ;;  %v2708_v1 = vld [vmem:[%s4398_s6 + $0xa8] sm:$0xf0] }
 0x40a   :  { %v2053_v45 = vpop.f32.mrf.mxu1 }
 0x40b   :  { %v2054_v35 = vadd.f32 %v2053_v45, %v1965_v48  ;;  %v2700_v45 = vld [vmem:[%s4398_s6 + $0x98] sm:$0xf0] }
 0x40c   :  { %v2703_v52 = vor.u32 %v2826_v22, %v2700_v45 }
 0x40d   :  { %v2133_v63 = vmax.f32 %v2054_v35, 0.0  ;;  %2092 = vmatmul.bf16.gmra.mxu1 %v2695_v24  ;;  %v2231_v35 = vunpack.c.l.bf16 %v3751_v15 }
 0x40f   :  { %v2165_v33 = vpack.c.bf16 %v2133_v63, %v2133_v63 }
 0x411   :  { %v2197_v37 = vunpack.c.l.bf16 %v2165_v33 }
 0x412   :  { %v2055_v14 = vpop.f32.mrf.mxu1 }
 0x413   :  { %v4180_v6 = vadd.f32 %v2229_v5, %v2197_v37  ;;  %v2056_v4 = vadd.f32 %v2055_v14, %v1967_v18  ;;  %v2230_v37 = vunpack.c.l.bf16 %v3736_v3 }
 0x415   :  { %v2134_v0 = vmax.f32 %v2056_v4, 0.0 }
 0x417   :  { %v2166_v46 = vpack.c.bf16 %v2134_v0, %v2134_v0  ;;  %v1972_v0 = vadd.f32 %v4097_v60, %v1557_v34  ;;  %v1975_v34 = vadd.f32 %v4117_v41, %v4143_v43  ;;  %v2232_v60 = vunpack.c.l.bf16 %v3753_v9 }
 0x418   :  { %v2233_v41 = vunpack.c.l.bf16 %v3768_v19  ;;  %v2234_v19 = vunpack.c.l.bf16 %v3770_v61 }
 0x419   :  { %v2198_v28 = vunpack.c.l.bf16 %v2166_v46  ;;  %v2828_v46 = vld [vmem:[%s4398_s6 + $0xa4] sm:$0xf] }
 0x41a   :  { %v2058_v14 = vpop.f32.mrf.mxu1 }
 0x41b   :  { %v4192_v4 = vadd.f32 %v2230_v37, %v2198_v28  ;;  %v2059_v18 = vadd.f32 %v2058_v14, %v1970_v58  ;;  %v2711_v28 = vor.u32 %v2828_v46, %v2708_v1  ;;  %v2830_v46 = vld [vmem:[%s4398_s6 + $0xb4] sm:$0xf]  ;;  %v2716_v1 = vld [vmem:[%s4398_s6 + $0xb8] sm:$0xf0] }
 0x41d   :  { %v2135_v33 = vmax.f32 %v2059_v18, 0.0  ;;  %2097 = vmatmul.bf16.gmra.mxu1 %v2703_v52  ;;  %v2293_v5 = vpack.c.bf16 %v4192_v4, %v4180_v6  ;;  %v1989_v18 = vpop.f32.mrf.mxu3 }
 0x41f   :  { %v2167_v48 = vpack.c.bf16 %v2135_v33, %v2135_v33 }
 0x421   :  { %v2199_v24 = vunpack.c.l.bf16 %v2167_v48 }
 0x422   :  { %v2060_v63 = vpop.f32.mrf.mxu1 }
 0x423   :  { %v4200_v3 = vadd.f32 %v2231_v35, %v2199_v24  ;;  %v2061_v22 = vadd.f32 %v2060_v63, %v1972_v0  ;;  %v1977_v24 = vadd.f32 %v4137_v62, %v1567_v57  ;;  %v1980_v57 = vadd.f32 %v4145_v49, %v4119_v20 }
 0x424   :  { %v2235_v20 = vunpack.c.l.bf16 %v3786_v31  ;;  %v2236_v31 = vunpack.c.l.bf16 %v3788_v11 }
 0x425   :  { %v2136_v45 = vmax.f32 %v2061_v22, 0.0 }
 0x427   :  { %v2168_v58 = vpack.c.bf16 %v2136_v45, %v2136_v45  ;;  %v1991_v45 = vpop.f32.mrf.mxu3 }
 0x429   :  { %v2200_v15 = vunpack.c.l.bf16 %v2168_v58 }
 0x42a   :  { %v2063_v37 = vpop.f32.mrf.mxu1 }
 0x42b   :  { %v4211_v52 = vadd.f32 %v2232_v60, %v2200_v15  ;;  %v2064_v14 = vadd.f32 %v2063_v37, %v1975_v34  ;;  %v2719_v34 = vor.u32 %v2830_v46, %v2716_v1 }
 0x42d   :  { %v2137_v33 = vmax.f32 %v2064_v14, 0.0  ;;  %2102 = vmatmul.bf16.gmra.mxu1 %v2711_v28  ;;  %v2294_v48 = vpack.c.bf16 %v4211_v52, %v4200_v3 }
 0x42f   :  { %v2169_v0 = vpack.c.bf16 %v2137_v33, %v2137_v33 }
 0x431   :  { %v2201_v35 = vunpack.c.l.bf16 %v2169_v0  ;;  %v1994_v0 = vpop.f32.mrf.mxu3 }
 0x432   :  { %v2065_v43 = vpop.f32.mrf.mxu1 }
 0x433   :  { %v4217_v63 = vadd.f32 %v2233_v41, %v2201_v35  ;;  %v2066_v9 = vadd.f32 %v2065_v43, %v1977_v24  ;;  %v1982_v24 = vadd.f32 %v4165_v30, %v4135_v40  ;;  %v1985_v30 = vadd.f32 %v4188_v44, %v4141_v39 }
 0x434   :  { %v2237_v39 = vunpack.c.l.bf16 %v3804_v12  ;;  %v2238_v12 = vunpack.c.l.bf16 %v3806_v2  ;;  %v2836_v2 = vld [vmem:[%s4398_s6 + $0xe4] sm:$0xf] }
 0x435   :  { %v2138_v22 = vmax.f32 %v2066_v9, 0.0  ;;  %v2832_v9 = vld [vmem:[%s4398_s6 + $0xc4] sm:$0xf] }
 0x437   :  { %v2170_v58 = vpack.c.bf16 %v2138_v22, %v2138_v22  ;;  %v2724_v22 = vld [vmem:[%s4398_s6 + $0xc8] sm:$0xf0] }
 0x438   :  { %v2727_v1 = vor.u32 %v2832_v9, %v2724_v22 }
 0x439   :  { %v2202_v62 = vunpack.c.l.bf16 %v2170_v58  ;;  %v1996_v58 = vpop.f32.mrf.mxu3 }
 0x43a   :  { %v2068_v15 = vpop.f32.mrf.mxu1 }
 0x43b   :  { %v4228_v60 = vadd.f32 %v2234_v19, %v2202_v62  ;;  %v2069_v28 = vadd.f32 %v2068_v15, %v1980_v57 }
 0x43d   :  { %v2139_v37 = vmax.f32 %v2069_v28, 0.0  ;;  %2107 = vmatmul.bf16.gmra.mxu1 %v2719_v34  ;;  %v2295_v14 = vpack.c.bf16 %v4228_v60, %v4217_v63 }
 0x43f   :  { %v2171_v33 = vpack.c.bf16 %v2139_v37, %v2139_v37  ;;  %v1987_v37 = vadd.f32 %v4198_v13, %v4102_v27  ;;  %v1990_v27 = vadd.f32 %v1989_v18, %v4087_v17  ;;  %v2740_v18 = vld [vmem:[%s4398_s6 + $0xe8] sm:$0xf0] }
 0x441   :  { %v2203_v35 = vunpack.c.l.bf16 %v2171_v33 }
 0x442   :  { %v2070_v49 = vpop.f32.mrf.mxu1 }
 0x443   :  { %v4235_v61 = vadd.f32 %v2235_v20, %v2203_v35  ;;  %v2071_v41 = vadd.f32 %v2070_v49, %v1982_v24  ;;  %v1999_v35 = vpop.f32.mrf.mxu3  ;;  %v2834_v49 = vld [vmem:[%s4398_s6 + $0xd4] sm:$0xf] }
 0x445   :  { %v2140_v43 = vmax.f32 %v2071_v41, 0.0  ;;  %v2732_v41 = vld [vmem:[%s4398_s6 + $0xd8] sm:$0xf0] }
 0x446   :  { %v2735_v9 = vor.u32 %v2834_v49, %v2732_v41 }
 0x447   :  { %v2172_v46 = vpack.c.bf16 %v2140_v43, %v2140_v43 }
 0x449   :  { %v2204_v40 = vunpack.c.l.bf16 %v2172_v46 }
 0x44a   :  { %v2073_v57 = vpop.f32.mrf.mxu1 }
 0x44b   :  { %v4246_v62 = vadd.f32 %v2236_v31, %v2204_v40  ;;  %v2074_v19 = vadd.f32 %v2073_v57, %v1985_v30  ;;  %v2001_v31 = vpop.f32.mrf.mxu3  ;;  %v1992_v57 = vadd.f32 %v1991_v45, %v4124_v25  ;;  %v2240_v45 = vunpack.c.l.bf16 %v3824_v36  ;;  %v2838_v36 = vld [vmem:[%s4398_s6 + $0xf4] sm:$0xf] }
 0x44d   :  { %v2141_v34 = vmax.f32 %v2074_v19, 0.0  ;;  %2112 = vmatmul.bf16.gmra.mxu1 %v2727_v1  ;;  %v2296_v15 = vpack.c.bf16 %v4246_v62, %v4235_v61 }
 0x44f   :  { %v2173_v28 = vpack.c.bf16 %v2141_v34, %v2141_v34 }
 0x451   :  { %v2205_v33 = vunpack.c.l.bf16 %v2173_v28 }
 0x452   :  { %v2075_v44 = vpop.f32.mrf.mxu1 }
 0x453   :  { %v4253_v11 = vadd.f32 %v2237_v39, %v2205_v33  ;;  %v2076_v24 = vadd.f32 %v2075_v44, %v1987_v37  ;;  %v2004_v39 = vpop.f32.mrf.mxu3  ;;  %v2239_v44 = vunpack.c.l.bf16 %v3822_v32 }
 0x455   :  { %v2142_v20 = vmax.f32 %v2076_v24, 0.0  ;;  %v1995_v24 = vadd.f32 %v1994_v0, %v4065_v38 }
 0x457   :  { %v2174_v43 = vpack.c.bf16 %v2142_v20, %v2142_v20  ;;  %v2743_v20 = vor.u32 %v2836_v2, %v2740_v18 }
 0x459   :  { %v2206_v13 = vunpack.c.l.bf16 %v2174_v43 }
 0x45a   :  { %v2078_v22 = vpop.f32.mrf.mxu1 }
 0x45b   :  { %v4263_v46 = vadd.f32 %v2238_v12, %v2206_v13  ;;  %v2079_v30 = vadd.f32 %v2078_v22, %v1990_v27  ;;  %v2006_v32 = vpop.f32.mrf.mxu3 }
 0x45d   :  { %2117 = vmatmul.bf16.gmra.mxu1 %v2735_v9  ;;  %v2297_v40 = vpack.c.bf16 %v4263_v46, %v4253_v11  ;;  %v2143_v1 = vmax.f32 %v2079_v30, 0.0  ;;  %v1997_v9 = vadd.f32 %v1996_v58, %v4067_v7  ;;  %v2242_v58 = vunpack.c.l.bf16 %v3842_v51  ;;  %v2309_v51 = vld [vmem:[%s4399_s8] sm:$0x3] }
 0x45e   :  { %2318 = vst [vmem:[#allocation1] ss:$9 sm:$0xff] %v2309_v51 }
 0x45f   :  { %v2175_v34 = vpack.c.bf16 %v2143_v1, %v2143_v1  ;;  %v2748_v1 = vld [vmem:[%s4398_s6 + $0xf8] sm:$0xf0] }
 0x461   :  { %v2207_v37 = vunpack.c.l.bf16 %v2175_v34  ;;  %v2241_v34 = vunpack.c.l.bf16 %v3840_v53 }
 0x462   :  { %v2080_v19 = vpop.f32.mrf.mxu1 }
 0x463   :  { %v2081_v28 = vadd.f32 %v2080_v19, %v1992_v57  ;;  %v4277_v41 = vadd.f32 %v2239_v44, %v2207_v37  ;;  %v2009_v44 = vpop.f32.mrf.mxu3 }
 0x465   :  { %v2144_v17 = vmax.f32 %v2081_v28, 0.0  ;;  %v2000_v28 = vadd.f32 %v1999_v35, %v4085_v59  ;;  %v2319_v63 = vld [vmem:[#allocation1] sm:$0xff] }
 0x467   :  { %v2176_v33 = vpack.c.bf16 %v2144_v17, %v2144_v17  ;;  %v2751_v17 = vor.u32 %v2838_v36, %v2748_v1 }
 0x469   :  { %v2208_v25 = vunpack.c.l.bf16 %v2176_v33 }
 0x46a   :  { %v2083_v49 = vpop.f32.mrf.mxu1 }
 0x46b   :  { %v4279_v43 = vadd.f32 %v2240_v45, %v2208_v25  ;;  %v2084_v27 = vadd.f32 %v2083_v49, %v1995_v24  ;;  %v1637_v25 = vpop.permute.xlu1 %1636  ;;  %v2011_v59 = vpop.f32.mrf.mxu3 }
 0x46d   :  { %2122 = vmatmul.bf16.gmra.mxu1 %v2743_v20  ;;  %v2298_v13 = vpack.c.bf16 %v4279_v43, %v4277_v41  ;;  %v2145_v12 = vmax.f32 %v2084_v27, 0.0  ;;  %v2002_v20 = vadd.f32 %v2001_v31, %v4047_v56 }
 0x46f   :  { %v2177_v38 = vpack.c.bf16 %v2145_v12, %v2145_v12 }
 0x471   :  { %v2209_v57 = vunpack.c.l.bf16 %v2177_v38 }
 0x472   :  { %v2085_v22 = vpop.f32.mrf.mxu1 }
 0x473   :  { %v2086_v0 = vadd.f32 %v2085_v22, %v1997_v9  ;;  %v2273_v18 = vadd.f32 %v2241_v34, %v2209_v57  ;;  %v1622_v12 = vpop.permute.xlu1 %1621  ;;  %v2243_v22 = vunpack.c.l.bf16 %v3852_v29  ;;  %v1627_v34 = vpop.permute.xlu2 %1626 }
 0x474   :  { %v2005_v9 = vadd.f32 %v2004_v39, %v1622_v12 }
 0x475   :  { %v2146_v30 = vmax.f32 %v2086_v0, 0.0  ;;  %v2244_v0 = vunpack.c.l.bf16 %v3856_v42 }
 0x477   :  { %v2178_v19 = vpack.c.bf16 %v2146_v30, %v2146_v30 }
 0x479   :  { %v2210_v7 = vunpack.c.l.bf16 %v2178_v19 }
 0x47a   :  { %v2088_v2 = vpop.f32.mrf.mxu1 }
 0x47b   :  { %v2274_v37 = vadd.f32 %v2242_v58, %v2210_v7  ;;  %v2089_v33 = vadd.f32 %v2088_v2, %v2000_v28  ;;  %v2014_v28 = vpop.f32.mrf.mxu3  ;;  %v2007_v7 = vadd.f32 %v2006_v32, %v1627_v34 }
 0x47c   :  { %v2015_v61 = vadd.f32 %v2014_v28, %v4147_v50 }
 0x47d   :  { %2127 = vmatmul.bf16.gmra.mxu1 %v2751_v17  ;;  %v2299_v24 = vpack.c.bf16 %v2274_v37, %v2273_v18  ;;  %v2147_v45 = vmax.f32 %v2089_v33, 0.0  ;;  %v2245_v17 = vunpack.c.l.bf16 %v3864_v10  ;;  %v2010_v37 = vadd.f32 %v2009_v44, %v4169_v26 }
 0x47e   :  { %v2012_v26 = vadd.f32 %v2011_v59, %v1637_v25 }
 0x47f   :  { %v2179_v41 = vpack.c.bf16 %v2147_v45, %v2147_v45  ;;  %v2246_v45 = vunpack.c.l.bf16 %v3867_v8 }
 0x481   :  { %v2211_v35 = vunpack.c.l.bf16 %v2179_v41 }
 0x482   :  { %v2090_v49 = vpop.f32.mrf.mxu1 }
 0x483   :  { %v2091_v53 = vadd.f32 %v2090_v49, %v2002_v20  ;;  %v2275_v31 = vadd.f32 %v2243_v22, %v2211_v35  ;;  %v2016_v20 = vpop.f32.mrf.mxu3 }
 0x484   :  { %v2017_v50 = vadd.f32 %v2016_v20, %v4163_v54 }
 0x485   :  { %v2148_v43 = vmax.f32 %v2091_v53, 0.0 }
 0x487   :  { %v2180_v27 = vpack.c.bf16 %v2148_v43, %v2148_v43 }
 0x489   :  { %v2212_v38 = vunpack.c.l.bf16 %v2180_v27 }
 0x48a   :  { %v2093_v56 = vpop.f32.mrf.mxu1 }
 0x48b   :  { %v2276_v30 = vadd.f32 %v2244_v0, %v2212_v38  ;;  %v2094_v36 = vadd.f32 %v2093_v56, %v2005_v9  ;;  %v2019_v11 = vpop.f32.mrf.mxu3  ;;  %v2250_v38 = vunpack.c.l.bf16 %v3910_v23 }
 0x48d   :  { %v2300_v1 = vpack.c.bf16 %v2276_v30, %v2275_v31  ;;  %v2149_v57 = vmax.f32 %v2094_v36, 0.0  ;;  %v4484_v36 = vld [vmem:[#allocation13_spill] sm:$0xff] }
 0x48f   :  { %v2181_v19 = vpack.c.bf16 %v2149_v57, %v2149_v57  ;;  %2323 = vmatpush.bf16.msra.mxu2 %v2300_v1 }
 0x491   :  { %v2213_v58 = vunpack.c.l.bf16 %v2181_v19  ;;  %v4485_v19 = vld [vmem:[#allocation23_spill] sm:$0xff] }
 0x492   :  { %v2095_v39 = vpop.f32.mrf.mxu1  ;;  %v2251_v34 = vunpack.c.l.bf16 %v4485_v19  ;;  %v4495_v19 = vld [vmem:[#allocation17_spill] sm:$0xff] }
 0x493   :  { %v4300_v2 = vadd.f32 %v2245_v17, %v2213_v58  ;;  %v2096_v29 = vadd.f32 %v2095_v39, %v2007_v7  ;;  %2324 = vmatpush.bf16.msra.mxu2 %v2299_v24  ;;  %v2021_v3 = vpop.f32.mrf.mxu3  ;;  %v4486_v39 = vld [vmem:[#allocation6_spill] sm:$0xff] }
 0x494   :  { %v2022_v1 = vadd.f32 %v2021_v3, %v4484_v36  ;;  %v4494_v36 = vld [vmem:[#allocation4_spill] sm:$0xff] }
 0x495   :  { %v2150_v42 = vmax.f32 %v2096_v29, 0.0 }
 0x497   :  { %v2182_v18 = vpack.c.bf16 %v2150_v42, %v2150_v42  ;;  %2325 = vmatpush.bf16.msra.mxu2 %v2298_v13  ;;  %v2247_v13 = vunpack.c.l.bf16 %v3880_v55  ;;  %v2248_v55 = vunpack.c.l.bf16 %v3889_v21  ;;  %v2249_v21 = vunpack.c.l.bf16 %v3902_v47 }
 0x499   :  { %v2214_v33 = vunpack.c.l.bf16 %v2182_v18  ;;  %v4487_v18 = vld [vmem:[#allocation18_spill] sm:$0xff] }
 0x49a   :  { %v2098_v49 = vpop.f32.mrf.mxu1 }
 0x49b   :  { %v4304_v41 = vadd.f32 %v2246_v45, %v2214_v33  ;;  %v2099_v32 = vadd.f32 %v2098_v49, %v2010_v37  ;;  %2326 = vmatpush.bf16.msra.mxu2 %v2297_v40  ;;  %v2024_v4 = vpop.f32.mrf.mxu3  ;;  %v2252_v37 = vunpack.c.l.bf16 %v4487_v18 }
 0x49c   :  { %v2025_v29 = vadd.f32 %v2024_v4, %v4486_v39 }
 0x49d   :  { %v2151_v10 = vmax.f32 %v2099_v32, 0.0  ;;  %v2301_v24 = vpack.c.bf16 %v4304_v41, %v4300_v2  ;;  %v2349_v2 = vld [vmem:[%s4400_s1] sm:$0x1] }
 0x49f   :  { %v2183_v53 = vpack.c.bf16 %v2151_v10, %v2151_v10  ;;  %2327 = vmatpush.bf16.msra.mxu2 %v2296_v15 }
 0x4a1   :  { %v2215_v8 = vunpack.c.l.bf16 %v2183_v53 }
 0x4a2   :  { %v2100_v44 = vpop.f32.mrf.mxu1 }
 0x4a3   :  { %v4315_v43 = vadd.f32 %v2247_v13, %v2215_v8  ;;  %v2101_v51 = vadd.f32 %v2100_v44, %v2012_v26  ;;  %2328 = vmatpush.bf16.msra.mxu2 %v2295_v14  ;;  %v2026_v28 = vpop.f32.mrf.mxu3  ;;  %v4488_v26 = vld [vmem:[#allocation14_spill] sm:$0xff]  ;;  %v4489_v44 = vld [vmem:[#allocation3_spill] sm:$0xff] }
 0x4a4   :  { %v2027_v8 = vadd.f32 %v2026_v28, %v4488_v26 }
 0x4a5   :  { %v2152_v46 = vmax.f32 %v2101_v51, 0.0  ;;  %v2253_v51 = vunpack.c.l.bf16 %v4489_v44  ;;  %v4498_v44 = vld [vmem:[#allocation12_spill] sm:$0xff] }
 0x4a7   :  { %v2184_v40 = vpack.c.bf16 %v2152_v46, %v2152_v46  ;;  %2329 = vmatpush.bf16.msra.mxu2 %v2294_v48 }
 0x4a9   :  { %v2216_v62 = vunpack.c.l.bf16 %v2184_v40 }
 0x4aa   :  { %v2103_v15 = vpop.f32.mrf.mxu1 }
 0x4ab   :  { %v4325_v25 = vadd.f32 %v2248_v55, %v2216_v62  ;;  %v2104_v59 = vadd.f32 %v2103_v15, %v2015_v61  ;;  %2330 = vmatpush.bf16.msra.mxu2 %v2293_v5  ;;  %v2020_v5 = vadd.f32 %v2019_v11, %v4167_v16  ;;  %v2029_v49 = vpop.f32.mrf.mxu3  ;;  %v4490_v15 = vld [vmem:[#allocation9_spill] sm:$0xff] }
 0x4ad   :  { %v2153_v60 = vmax.f32 %v2104_v59, 0.0  ;;  %v2302_v14 = vpack.c.bf16 %v4325_v25, %v4315_v43  ;;  %v2030_v59 = vadd.f32 %v2029_v49, %v4490_v15 }
 0x4ae   :  { %2331 = vmatmul.bf16.vlgmr.msra.gmra.mxu2 %v2319_v63 }
 0x4af   :  { %v2185_v52 = vpack.c.bf16 %v2153_v60, %v2153_v60  ;;  %v4491_v60 = vld [vmem:[#allocation21_spill] sm:$0xff] }
 0x4b0   :  { %v2254_v3 = vunpack.c.l.bf16 %v4491_v60 }
 0x4b1   :  { %v2217_v48 = vunpack.c.l.bf16 %v2185_v52 }
 0x4b2   :  { %v2105_v35 = vpop.f32.mrf.mxu1 }
 0x4b3   :  { %v4334_v27 = vadd.f32 %v2249_v21, %v2217_v48  ;;  %v2106_v12 = vadd.f32 %v2105_v35, %v2017_v50  ;;  %v2031_v62 = vpop.f32.mrf.mxu3 }
 0x4b5   :  { %v2154_v9 = vmax.f32 %v2106_v12, 0.0 }
 0x4b7   :  { %v2186_v6 = vpack.c.bf16 %v2154_v9, %v2154_v9  ;;  %v4492_v9 = vld [vmem:[#allocation19_spill] sm:$0xff] }
 0x4b9   :  { %v2218_v22 = vunpack.c.l.bf16 %v2186_v6  ;;  %v2032_v6 = vadd.f32 %v2031_v62, %v4492_v9 }
 0x4ba   :  { %v2108_v0 = vpop.f32.mrf.mxu1 }
 0x4bb   :  { %v4338_v56 = vadd.f32 %v2250_v38, %v2218_v22  ;;  %v2109_v31 = vadd.f32 %v2108_v0, %v2020_v5  ;;  %v2034_v12 = vpop.f32.mrf.mxu3 }
 0x4bd   :  { %v2155_v54 = vmax.f32 %v2109_v31, 0.0  ;;  %v2303_v47 = vpack.c.bf16 %v4338_v56, %v4334_v27 }
 0x4bf   :  { %v2187_v30 = vpack.c.bf16 %v2155_v54, %v2155_v54  ;;  %v4493_v54 = vld [vmem:[#allocation8_spill] sm:$0xff] }
 0x4c1   :  { %v2219_v57 = vunpack.c.l.bf16 %v2187_v30  ;;  %v2035_v30 = vadd.f32 %v2034_v12, %v4493_v54 }
 0x4c2   :  { %v2110_v7 = vpop.f32.mrf.mxu1 }
 0x4c3   :  { %v4344_v16 = vadd.f32 %v2251_v34, %v2219_v57  ;;  %v2111_v58 = vadd.f32 %v2110_v7, %v2022_v1  ;;  %v2255_v1 = vunpack.c.l.bf16 %v4494_v36  ;;  %v2256_v34 = vunpack.c.l.bf16 %v4495_v19  ;;  %v2036_v28 = vpop.f32.mrf.mxu3  ;;  %v2320_v36 = vld [vmem:[#allocation1 + $0x9] sm:$0xff] }
 0x4c5   :  { %v2156_v23 = vmax.f32 %v2111_v58, 0.0 }
 0x4c7   :  { %v2188_v17 = vpack.c.bf16 %v2156_v23, %v2156_v23 }
 0x4c9   :  { %v2220_v42 = vunpack.c.l.bf16 %v2188_v17 }
 0x4ca   :  { %v2113_v33 = vpop.f32.mrf.mxu1 }
 0x4cb   :  { %v4348_v45 = vadd.f32 %v2252_v37, %v2220_v42  ;;  %v2114_v20 = vadd.f32 %v2113_v33, %v2025_v29  ;;  %v4496_v42 = vld [vmem:[#allocation10_spill] sm:$0xff]  ;;  %v2039_v49 = vpop.f32.mrf.mxu3 }
 0x4cc   :  { %v2037_v18 = vadd.f32 %v2036_v28, %v4496_v42 }
 0x4cd   :  { %v2157_v32 = vmax.f32 %v2114_v20, 0.0  ;;  %v2304_v10 = vpack.c.bf16 %v4348_v45, %v4344_v16 }
 0x4cf   :  { %v2189_v53 = vpack.c.bf16 %v2157_v32, %v2157_v32 }
 0x4d1   :  { %v2221_v13 = vunpack.c.l.bf16 %v2189_v53 }
 0x4d2   :  { %v2115_v11 = vpop.f32.mrf.mxu1 }
 0x4d3   :  { %v4354_v46 = vadd.f32 %v2253_v51, %v2221_v13  ;;  %v2116_v40 = vadd.f32 %v2115_v11, %v2027_v8  ;;  %v4497_v8 = vld [vmem:[#allocation16_spill] sm:$0xff]  ;;  %v2257_v51 = vunpack.c.l.bf16 %v4498_v44 }
 0x4d4   :  { %v2040_v13 = vadd.f32 %v2039_v49, %v4497_v8 }
 0x4d5   :  { %v2158_v61 = vmax.f32 %v2116_v40, 0.0 }
 0x4d7   :  { %v2190_v55 = vpack.c.bf16 %v2158_v61, %v2158_v61 }
 0x4d9   :  { %v2222_v63 = vunpack.c.l.bf16 %v2190_v55 }
 0x4da   :  { %v2118_v52 = vpop.f32.mrf.mxu1 }
 0x4db   :  { %v2286_v50 = vadd.f32 %v2254_v3, %v2222_v63  ;;  %v2119_v48 = vadd.f32 %v2118_v52, %v2030_v59  ;;  %v2041_v63 = vpop.f32.mrf.mxu3  ;;  %v4500_v3 = vld [vmem:[#allocation15_spill] sm:$0xff] }
 0x4dc   :  { %v2042_v52 = vadd.f32 %v2041_v63, %v4500_v3 }
 0x4dd   :  { %v2305_v21 = vpack.c.bf16 %v2286_v50, %v4354_v46  ;;  %v2159_v35 = vmax.f32 %v2119_v48, 0.0  ;;  %v4499_v46 = vld [vmem:[#allocation20_spill] sm:$0xff] }
 0x4de   :  { %v2258_v40 = vunpack.c.l.bf16 %v4499_v46 }
 0x4df   :  { %v2191_v5 = vpack.c.bf16 %v2159_v35, %v2159_v35 }
 0x4e1   :  { %v2223_v0 = vunpack.c.l.bf16 %v2191_v5 }
 0x4e2   :  { %v2120_v4 = vpop.f32.mrf.mxu1 }
 0x4e3   :  { %v2121_v22 = vadd.f32 %v2120_v4, %v2032_v6  ;;  %v2287_v58 = vadd.f32 %v2255_v1, %v2223_v0  ;;  %v4501_v4 = vld [vmem:[#allocation11_spill] sm:$0xff] }
 0x4e4   :  { %v2259_v5 = vunpack.c.l.bf16 %v4501_v4 }
 0x4e5   :  { %v2160_v38 = vmax.f32 %v2121_v22, 0.0 }
 0x4e7   :  { %v2192_v31 = vpack.c.bf16 %v2160_v38, %v2160_v38  ;;  %v4502_v38 = vld [vmem:[#allocation22_spill] sm:$0xff] }
 0x4e8   :  { %v2260_v0 = vunpack.c.l.bf16 %v4502_v38 }
 0x4e9   :  { %v2224_v57 = vunpack.c.l.bf16 %v2192_v31 }
 0x4ea   :  { %v2123_v7 = vpop.f32.mrf.mxu1 }
 0x4eb   :  { %v2288_v23 = vadd.f32 %v2256_v34, %v2224_v57  ;;  %v2124_v17 = vadd.f32 %v2123_v7, %v2035_v30  ;;  %v2314_v57 = vpop.permute.xlu0 %2313 }
 0x4ec   :  { %v2316_v19 = vperm.slane %v2314_v57, 0 }
 0x4ed   :  { %v2306_v39 = vpack.c.bf16 %v2288_v23, %v2287_v58  ;;  %v2161_v29 = vmax.f32 %v2124_v17, 0.0 }
 0x4ef   :  { %v2193_v33 = vpack.c.bf16 %v2161_v29, %v2161_v29 }
 0x4f1   :  { %v2225_v53 = vunpack.c.l.bf16 %v2193_v33 }
 0x4f2   :  { %v2125_v37 = vpop.f32.mrf.mxu1 }
 0x4f3   :  { %v2126_v20 = vadd.f32 %v2125_v37, %v2037_v18  ;;  %v2289_v62 = vadd.f32 %v2257_v51, %v2225_v53 }
 0x4f5   :  { %v2162_v32 = vmax.f32 %v2126_v20, 0.0 }
 0x4f7   :  { %v2194_v26 = vpack.c.bf16 %v2162_v32, %v2162_v32 }
 0x4f9   :  { %v2226_v11 = vunpack.c.l.bf16 %v2194_v26 }
 0x4fa   :  { %v2128_v61 = vpop.f32.mrf.mxu1 }
 0x4fb   :  { %v2290_v55 = vadd.f32 %v2258_v40, %v2226_v11  ;;  %v2129_v15 = vadd.f32 %v2128_v61, %v2040_v13 }
 0x4fd   :  { %v2307_v59 = vpack.c.bf16 %v2290_v55, %v2289_v62  ;;  %v2163_v60 = vmax.f32 %v2129_v15, 0.0 }
 0x4ff   :  { %v2195_v48 = vpack.c.bf16 %v2163_v60, %v2163_v60 }
 0x501   :  { %v2227_v9 = vunpack.c.l.bf16 %v2195_v48 }
 0x502   :  { %v2130_v50 = vpop.f32.mrf.mxu1 }
 0x503   :  { %v2131_v35 = vadd.f32 %v2130_v50, %v2042_v52  ;;  %v2291_v31 = vadd.f32 %v2259_v5, %v2227_v9 }
 0x505   :  { %v2164_v12 = vmax.f32 %v2131_v35, 0.0 }
 0x507   :  { %v2196_v6 = vpack.c.bf16 %v2164_v12, %v2164_v12 }
 0x509   :  { %v2228_v22 = vunpack.c.l.bf16 %v2196_v6 }
 0x50b   :  { %v2292_v54 = vadd.f32 %v2260_v0, %v2228_v22 }
 0x50d   :  { %v2308_v30 = vpack.c.bf16 %v2292_v54, %v2291_v31 }
 0x50f   :  { %2336 = vmatpush.bf16.msra.mxu3 %v2308_v30 }
 0x513   :  { %2337 = vmatpush.bf16.msra.mxu3 %v2307_v59 }
 0x517   :  { %2338 = vmatpush.bf16.msra.mxu3 %v2306_v39 }
 0x51b   :  { %2339 = vmatpush.bf16.msra.mxu3 %v2305_v21 }
 0x51f   :  { %2340 = vmatpush.bf16.msra.mxu3 %v2304_v10 }
 0x523   :  { %2341 = vmatpush.bf16.msra.mxu3 %v2303_v47 }
 0x527   :  { %2342 = vmatpush.bf16.msra.mxu3 %v2302_v14 }
 0x52b   :  { %2343 = vmatpush.bf16.msra.mxu3 %v2301_v24 }
 0x52e   :  { %2344 = vmatmul.bf16.vlgmr.msra.gmra.mxu3 %v2320_v36 }
 0x531   :  { %v2332_v1 = vpop.f32.mrf.mxu2 }
 0x532   :  { %v2333_v16 = vadd.f32 %v2332_v1, %v2316_v19 }
 0x539   :  { %v2334_v21 = vpop.f32.mrf.mxu2 }
 0x5b1   :  { %v2345_v45 = vpop.f32.mrf.mxu3 }
 0x5b2   :  { %v2346_v10 = vadd.f32 %v2345_v45, %v2333_v16 }
 0x5b4   :  { %v2350_v34 = vand.u32 2147483647, %v2346_v10  ;;  %v2354_v24 = vmax.f32 %v2346_v10, 0.0  ;;  %v2355_v28 = vmul.f32 %v2349_v2, %v2346_v10  ;;  %vm2370_vm2 = vcmp.ge.f32.partialorder %v2346_v10, 0.0 }
 0x5b6   :  { %v2351_v27 = vsub.f32 0.0, %v2350_v34  ;;  %v2356_v29 = vsub.f32 %v2354_v24, %v2355_v28 }
 0x5b8   :  { %v2352_v56 = vmul.f32 1.442695, %v2351_v27 }
 0x5b9   :  { %v2347_v47 = vpop.f32.mrf.mxu3 }
 0x5ba   :  { %2868 = vpow2.f32 %v2352_v56 }
 0x5c0   :  { %v2869_v43 = vpop.eup %2868 }
 0x5c1   :  { %v2357_v25 = vadd.f32 1.0, %v2869_v43  ;;  %v2360_v14 = vmul.f32 -0.5, %v2869_v43  ;;  %v2363_v7 = vand.u32 2147483647, %v2869_v43 }
 0x5c3   :  { %2870 = vlog2.f32 %v2357_v25  ;;  %v2361_v41 = vadd.f32 1.0, %v2360_v14  ;;  %vm2364_vm1 = vcmp.lt.f32.partialorder %v2363_v7, 0.0004427343 }
 0x5c4   :  { %2872 = vrcp.f32 %v2357_v25 }
 0x5c5   :  { %v2362_v39 = vmul.f32 %v2869_v43, %v2361_v41 }
 0x5c9   :  { %v2871_v58 = vpop.eup %2870 }
 0x5ca   :  { %v2873_v23 = vpop.eup %2872  ;;  %v2359_v17 = vmul.f32 0.6931472, %v2871_v58 }
 0x5cb   :  { %v2371_v42 = vmul.f32 %v2873_v23, %v2869_v43 }
 0x5cc   :  { %v2365_v18 = vsel %vm2364_vm1, %v2362_v39, %v2359_v17 }
 0x5cd   :  { %v2366_v37 = vadd.f32 %v2365_v18, %v2356_v29  ;;  %v2372_v33 = vsel %vm2370_vm2, %v2873_v23, %v2371_v42 }
 0x5ce   :  { %v2373_v20 = vmax.f32 %v2372_v33, 0.0 }
 0x5cf   :  { %2367 = vst [vmem:[%s4401_s10] sm:$0x1] %v2366_v37 }
 0x5d0   :  { %v2374_v49 = vmin.f32 %v2373_v20, 1.0 }
 0x5d2   :  { %2375 = vst [vmem:[%s4402_s11] sm:$0x1] %v2374_v49 }

</bundles_post_ra>
